<compile_context>
chip_gen: v7x
topology: tpu7x:2x2x1
jax: 0.10.0
libtpu: 0.0.40
codegen_flags: <defaults>
</compile_context>

<pallas_src>
import functools
import math

import jax
import jax.numpy as jnp
from jax import lax
from jax.experimental import pallas as pl
from jax.experimental.pallas import tpu as pltpu  # noqa: F401  (kept for TPU-specific tuning hooks)

# ----------------------------- config ---------------------------------------
B = 2           # batch
S = 8           # sequence length
H = 32          # hidden size
NH = 4          # num attention heads
DH = H // NH    # head dim
I = 64          # intermediate size
M = 8           # (working) memory length
LN_EPS = 1e-12  # BERT layer_norm_eps
LANES = 128     # slab lane width


# --------------------------- in-kernel helpers --------------------------------
def _layer_norm(y, gamma, beta):
    mu = jnp.mean(y, axis=-1, keepdims=True)
    var = jnp.mean((y - mu) ** 2, axis=-1, keepdims=True)
    return (y - mu) * lax.rsqrt(var + LN_EPS) * gamma + beta


def _softmax_rows(s):
    m = jnp.max(s, axis=-1, keepdims=True)
    e = jnp.exp(s - m)
    return e / jnp.sum(e, axis=-1, keepdims=True)  # exact divide (tolerance)


def _attn_core(x, q_all, k_all, v_all, mask_ref, wo, bo, g, beta,
               batch, s_q, s_kv, num_heads, head_dim):
    """Scores/softmax/P@V per (batch, head); one fused output projection.

    x      : (B*s_q, H)  residual input
    q_all  : (B*s_q, H)  fused Q projection (scale already folded in)
    k_all  : (B*s_kv, H) fused K projection
    v_all  : (B*s_kv, H) fused V projection
    mask_ref: (B, s_kv)  additive mask ref
    """
    ctx_rows = []
    for b in range(batch):                       # static loop (masks differ)
        m_b = mask_ref[b:b + 1, :]               # (1, s_kv)
        qb = q_all[b * s_q:(b + 1) * s_q, :]
        kb = k_all[b * s_kv:(b + 1) * s_kv, :]
        vb = v_all[b * s_kv:(b + 1) * s_kv, :]
        heads = []
        for h in range(num_heads):               # static head loop (tiny mms)
            lo, hi = h * head_dim, (h + 1) * head_dim
            sc = lax.dot_general(qb[:, lo:hi], kb[:, lo:hi],
                                 (((1,), (1,)), ((), ())),
                                 preferred_element_type=jnp.float32) + m_b
            p = _softmax_rows(sc)
            heads.append(jnp.dot(p, vb[:, lo:hi],
                                 preferred_element_type=jnp.float32))
        ctx_rows.append(jnp.concatenate(heads, axis=-1))   # (s_q, H)
    ctx = jnp.concatenate(ctx_rows, axis=0)                 # (B*s_q, H)
    y = jnp.dot(ctx, wo, preferred_element_type=jnp.float32) + bo + x
    return _layer_norm(y, g, beta)


# ------------------------------ fused kernel ----------------------------------
def memoria_layer_kernel(*refs, entries, batch, s_q, kv_lens, has_wm, has_ltm,
                         hidden, num_heads, head_dim):
    it = iter(refs)
    x_ref = next(it)
    self_mask_ref = next(it)
    wm_ref = wm_mask_ref = ltm_ref = ltm_mask_ref = None
    if has_wm:
        wm_ref = next(it)
        wm_mask_ref = next(it)
    if has_ltm:
        ltm_ref = next(it)
        ltm_mask_ref = next(it)
    w_ref = next(it)
    out_ref = next(it)

    def slab(name):
        r0, nr, nc = entries[name]               # static python ints
        return w_ref[r0:r0 + nr, 0:nc]

    x = x_ref[...]                               # (B*S, H), f32

    # ---- stage 1: self-attention (fused QKV projection) ----
    qkv = jnp.dot(x, slab("self_wqkv"),
                  preferred_element_type=jnp.float32) + slab("self_bqkv")
    a = _attn_core(x,
                   qkv[:, 0:hidden], qkv[:, hidden:2 * hidden],
                   qkv[:, 2 * hidden:3 * hidden],
                   self_mask_ref,
                   slab("self_wo"), slab("self_bo"),
                   slab("self_ln_g"), slab("self_ln_b"),
                   batch, s_q, s_q, num_heads, head_dim)

    # ---- memory cross-attention stage(s): shared memory_attention weights ----
    def cross(a_in, kv_states_ref, mask_ref, s_kv):
        q_all = jnp.dot(a_in, slab("mem_wq"),
                        preferred_element_type=jnp.float32) + slab("mem_bq")
        kvp = jnp.dot(kv_states_ref[...], slab("mem_wkv"),
                      preferred_element_type=jnp.float32) + slab("mem_bkv")
        return _attn_core(a_in, q_all,
                          kvp[:, 0:hidden], kvp[:, hidden:2 * hidden],
                          mask_ref,
                          slab("mem_wo"), slab("mem_bo"),
                          slab("mem_ln_g"), slab("mem_ln_b"),
                          batch, s_q, s_kv, num_heads, head_dim)

    if has_wm:
        a = cross(a, wm_ref, wm_mask_ref, kv_lens["wm"])
    if has_ltm:
        a = cross(a, ltm_ref, ltm_mask_ref, kv_lens["ltm"])

    # ---- feed_forward_chunk: dense -> exact erf GELU -> dense -> +res -> LN ----
    hmid = jnp.dot(a, slab("ffn_w1"),
                   preferred_element_type=jnp.float32) + slab("ffn_b1")
    hmid = 0.5 * hmid * (1.0 + lax.erf(hmid * (1.0 / math.sqrt(2.0))))
    y = jnp.dot(hmid, slab("ffn_w2"),
                preferred_element_type=jnp.float32) + slab("ffn_b2") + a
    out_ref[...] = _layer_norm(y, slab("ffn_ln_g"), slab("ffn_ln_b"))


# ---------------------------- wrapper / packing --------------------------------
def _pack_slab(params, has_mem):
    """Pack every weight into one lane-dense (rows, 128) f32 slab (host-side).

    Matrices first (8-aligned row offsets), then 1-row bias/LN vectors.
    Returns (slab, entries) with entries[name] = (row0, nrows, ncols)."""
    scale = 1.0 / math.sqrt(DH)
    blocks, entries = [], {}
    cur = 0

    def add(name, arr):
        nonlocal cur
        arr = jnp.asarray(arr, jnp.float32)
        if arr.ndim == 1:
            arr = arr.reshape(1, -1)
        r, c = arr.shape
        blocks.append(jnp.pad(arr, ((0, 0), (0, LANES - c))))
        entries[name] = (cur, r, c)
        cur += r

    pa = params["attention"]
    fp = params["ffn"]
    pm = params["memory_attention"] if has_mem else None

    # matrices (all row counts are multiples of 8 -> aligned slices)
    add("self_wqkv", jnp.concatenate([pa["wq"] * scale, pa["wk"], pa["wv"]], axis=1))
    add("self_wo", pa["wo"])
    if has_mem:
        add("mem_wq", pm["wq"] * scale)
        add("mem_wkv", jnp.concatenate([pm["wk"], pm["wv"]], axis=1))
        add("mem_wo", pm["wo"])
    add("ffn_w1", fp["w1"])
    add("ffn_w2", fp["w2"])

    # 1-row vectors
    add("self_bqkv", jnp.concatenate([pa["bq"] * scale, pa["bk"], pa["bv"]], axis=1))
    add("self_bo", pa["bo"])
    add("self_ln_g", pa["ln_g"])
    add("self_ln_b", pa["ln_b"])
    if has_mem:
        add("mem_bq", pm["bq"] * scale)
        add("mem_bkv", jnp.concatenate([pm["bk"], pm["bv"]], axis=1))
        add("mem_bo", pm["bo"])
        add("mem_ln_g", pm["ln_g"])
        add("mem_ln_b", pm["ln_b"])
    add("ffn_b1", fp["b1"])
    add("ffn_b2", fp["b2"])
    add("ffn_ln_g", fp["ln_g"])
    add("ffn_ln_b", fp["ln_b"])

    slab = jnp.concatenate(blocks, axis=0)
    pad = (-slab.shape[0]) % 8
    if pad:
        slab = jnp.pad(slab, ((0, pad), (0, 0)))
    return slab, entries


def memoria_bert_layer_forward(params, hidden_states, attention_mask,
                               working_memory_states=None,
                               working_memory_attention_mask=None,
                               memory_states=None,
                               memory_attention_mask=None):
    """Fused Pallas implementation of MemoriaBertLayer.forward
    (use_memory_attention=True, output_attentions=False, past_key_value=None).
    Returns layer_output [B, S, H]."""
    b, s, hdim = hidden_states.shape
    has_wm = (working_memory_states is not None
              and working_memory_attention_mask is not None)
    has_ltm = (memory_states is not None and memory_attention_mask is not None)
    has_mem = has_wm or has_ltm

    slab, entries = _pack_slab(params, has_mem)

    # activations/masks stay separate; batch flattened for lane-dense matmuls
    inputs = [hidden_states.reshape(b * s, hdim),
              attention_mask.reshape(b, s)]
    kv_lens = {}
    if has_wm:
        m = working_memory_states.shape[1]
        kv_lens["wm"] = m
        inputs += [working_memory_states.reshape(b * m, hdim),
                   working_memory_attention_mask.reshape(b, m)]
    if has_ltm:
        ml = memory_states.shape[1]
        kv_lens["ltm"] = ml
        inputs += [memory_states.reshape(b * ml, hdim),
                   memory_attention_mask.reshape(b, ml)]
    inputs.append(slab)

    kern = functools.partial(memoria_layer_kernel, entries=entries,
                             batch=b, s_q=s, kv_lens=kv_lens,
                             has_wm=has_wm, has_ltm=has_ltm,
                             hidden=hdim, num_heads=NH, head_dim=DH)

    # Single grid step (no grid): whole arrays live in VMEM, one DMA per input,
    # no per-step overhead; avoids duplicating weight traffic across cores.
    out = pl.pallas_call(
        kern,
        out_shape=jax.ShapeDtypeStruct((b * s, hdim), jnp.float32),
    )(*inputs)
    return out.reshape(b, s, hdim)


# ------------------------- pure-JAX reference (for check) ----------------------
def _ref_attn(x, kv, mask, p):
    q = x @ p["wq"] + p["bq"]
    k = kv @ p["wk"] + p["bk"]
    v = kv @ p["wv"] + p["bv"]
    b, s, _ = x.shape
    skv = kv.shape[1]
    q = q.reshape(b, s, NH, DH).transpose(0, 2, 1, 3)
    k = k.reshape(b, skv, NH, DH).transpose(0, 2, 1, 3)
    v = v.reshape(b, skv, NH, DH).transpose(0, 2, 1, 3)
    scores = jnp.einsum("bhqd,bhkd->bhqk", q, k) / math.sqrt(DH)
    scores = scores + mask[:, :, None, :]
    probs = jax.nn.softmax(scores, axis=-1)
    ctx = jnp.einsum("bhqk,bhkd->bhqd", probs, v).transpose(0, 2, 1, 3).reshape(b, s, H)
    attn = ctx @ p["wo"] + p["bo"]
    y = attn + x
    mu = y.mean(-1, keepdims=True)
    var = ((y - mu) ** 2).mean(-1, keepdims=True)
    return (y - mu) / jnp.sqrt(var + LN_EPS) * p["ln_g"] + p["ln_b"]


def _ref_ffn(x, p):
    h = x @ p["w1"] + p["b1"]
    h = 0.5 * h * (1.0 + jax.lax.erf(h / math.sqrt(2.0)))
    y = h @ p["w2"] + p["b2"] + x
    mu = y.mean(-1, keepdims=True)
    var = ((y - mu) ** 2).mean(-1, keepdims=True)
    return (y - mu) / jnp.sqrt(var + LN_EPS) * p["ln_g"] + p["ln_b"]


def _ref_forward(params, x, am, wm, wm_am):
    a = _ref_attn(x, x, am, params["attention"])
    a = _ref_attn(a, wm, wm_am, params["memory_attention"])
    return _ref_ffn(a, params["ffn"])


# ------------------------------- params ----------------------------------------
def make_params(key):
    ks = iter(jax.random.split(key, 40))

    def lin(din, dout):
        return (jax.random.normal(next(ks), (din, dout), jnp.float32) * 0.02,
                jax.random.normal(next(ks), (1, dout), jnp.float32) * 0.02)

    def attn_params():
        wq, bq = lin(H, H)
        wk, bk = lin(H, H)
        wv, bv = lin(H, H)
        wo, bo = lin(H, H)
        return dict(wq=wq, bq=bq, wk=wk, bk=bk, wv=wv, bv=bv, wo=wo, bo=bo,
                    ln_g=jnp.ones((1, H), jnp.float32),
                    ln_b=jnp.zeros((1, H), jnp.float32))

    w1, b1 = lin(H, I)
    w2, b2 = lin(I, H)
    return dict(
        attention=attn_params(),
        memory_attention=attn_params(),
        ffn=dict(w1=w1, b1=b1, w2=w2, b2=b2,
                 ln_g=jnp.ones((1, H), jnp.float32),
                 ln_b=jnp.zeros((1, H), jnp.float32)),
    )


# --------------------------------- main -----------------------------------------
if __name__ == "__main__":
    key = jax.random.PRNGKey(0)
    kp, kx, km = jax.random.split(key, 3)
    params = make_params(kp)

    hidden_states = jax.random.normal(kx, (B, S, H), jnp.float32)
    working_memory_states = jax.random.normal(km, (B, M, H), jnp.float32)

    # additive extended masks [B, 1, S_kv]: keep all tokens except the last one
    # of batch element 1 (self-attn) / last two memory slots of element 1.
    self_keep = jnp.ones((B, 1, S), jnp.float32).at[1, 0, -1].set(0.0)
    wm_keep = jnp.ones((B, 1, M), jnp.float32).at[1, 0, -2:].set(0.0)
    attention_mask = (1.0 - self_keep) * -1e9
    working_memory_attention_mask = (1.0 - wm_keep) * -1e9

    out = memoria_bert_layer_forward(
        params, hidden_states, attention_mask,
        working_memory_states=working_memory_states,
        working_memory_attention_mask=working_memory_attention_mask,
    )
    out = jax.block_until_ready(out)

    ref = _ref_forward(params, hidden_states, attention_mask,
                       working_memory_states, working_memory_attention_mask)
    assert out.shape == (B, S, H)
    assert jnp.allclose(out, ref, atol=2e-4, rtol=2e-4), \
        f"max abs diff {jnp.max(jnp.abs(out - ref))}"

    print("KERNEL_OK")
</pallas_src>

<mosaic_0001>
module attributes {stable_mosaic.version = 11 : i64} {
  func.func @memoria_layer_kernel(%arg0: memref<16x32xf32, #tpu.memory_space<vmem>>, %arg1: memref<2x8xf32, #tpu.memory_space<vmem>>, %arg2: memref<16x32xf32, #tpu.memory_space<vmem>>, %arg3: memref<2x8xf32, #tpu.memory_space<vmem>>, %arg4: memref<272x128xf32, #tpu.memory_space<vmem>>, %arg5: memref<16x32xf32, #tpu.memory_space<vmem>>) attributes {dimension_semantics = [], scalar_prefetch = 0 : i64, scratch_operands = 0 : i64, tpu.core_type = #tpu.core_type<tc>} {
    %c0 = arith.constant 0 : index
    %c0_0 = arith.constant 0 : index
    %0 = vector.load %arg0[%c0, %c0_0] : memref<16x32xf32, #tpu.memory_space<vmem>>, vector<16x32xf32>
    %c0_1 = arith.constant 0 : index
    %c0_2 = arith.constant 0 : index
    %1 = vector.load %arg4[%c0_1, %c0_2] : memref<272x128xf32, #tpu.memory_space<vmem>>, vector<32x96xf32>
    %cst = arith.constant dense<0.000000e+00> : vector<16x96xf32>
    %2 = tpu.matmul %0, %1, %cst {dimension_numbers = #tpu.dot_dimension_numbers<[1], [0], [0], [1], [0, 0, 1, 1], [], []>} : vector<16x32xf32>, vector<32x96xf32>, vector<16x96xf32> -> vector<16x96xf32>
    %c256 = arith.constant 256 : index
    %c0_3 = arith.constant 0 : index
    %3 = vector.load %arg4[%c256, %c0_3] : memref<272x128xf32, #tpu.memory_space<vmem>>, vector<1x96xf32>
    %4 = vector.broadcast %3 : vector<1x96xf32> to vector<16x96xf32>
    %5 = arith.addf %2, %4 : vector<16x96xf32>
    %6 = vector.extract_strided_slice %5 {offsets = [0, 0], sizes = [16, 32], strides = [1, 1]} : vector<16x96xf32> to vector<16x32xf32>
    %7 = vector.extract_strided_slice %5 {offsets = [0, 32], sizes = [16, 32], strides = [1, 1]} : vector<16x96xf32> to vector<16x32xf32>
    %8 = vector.extract_strided_slice %5 {offsets = [0, 64], sizes = [16, 32], strides = [1, 1]} : vector<16x96xf32> to vector<16x32xf32>
    %c32 = arith.constant 32 : index
    %c0_4 = arith.constant 0 : index
    %9 = vector.load %arg4[%c32, %c0_4] : memref<272x128xf32, #tpu.memory_space<vmem>>, vector<32x32xf32>
    %c257 = arith.constant 257 : index
    %c0_5 = arith.constant 0 : index
    %10 = vector.load %arg4[%c257, %c0_5] : memref<272x128xf32, #tpu.memory_space<vmem>>, vector<1x32xf32>
    %c258 = arith.constant 258 : index
    %c0_6 = arith.constant 0 : index
    %11 = vector.load %arg4[%c258, %c0_6] : memref<272x128xf32, #tpu.memory_space<vmem>>, vector<1x32xf32>
    %c259 = arith.constant 259 : index
    %c0_7 = arith.constant 0 : index
    %12 = vector.load %arg4[%c259, %c0_7] : memref<272x128xf32, #tpu.memory_space<vmem>>, vector<1x32xf32>
    %c0_8 = arith.constant 0 : index
    %c0_9 = arith.constant 0 : index
    %13 = vector.load %arg1[%c0_8, %c0_9] : memref<2x8xf32, #tpu.memory_space<vmem>>, vector<1x8xf32>
    %14 = vector.extract_strided_slice %6 {offsets = [0, 0], sizes = [8, 32], strides = [1, 1]} : vector<16x32xf32> to vector<8x32xf32>
    %15 = vector.extract_strided_slice %7 {offsets = [0, 0], sizes = [8, 32], strides = [1, 1]} : vector<16x32xf32> to vector<8x32xf32>
    %16 = vector.extract_strided_slice %8 {offsets = [0, 0], sizes = [8, 32], strides = [1, 1]} : vector<16x32xf32> to vector<8x32xf32>
    %17 = vector.extract_strided_slice %14 {offsets = [0, 0], sizes = [8, 8], strides = [1, 1]} : vector<8x32xf32> to vector<8x8xf32>
    %18 = vector.extract_strided_slice %15 {offsets = [0, 0], sizes = [8, 8], strides = [1, 1]} : vector<8x32xf32> to vector<8x8xf32>
    %cst_10 = arith.constant dense<0.000000e+00> : vector<8x8xf32>
    %19 = tpu.matmul %17, %18, %cst_10 {dimension_numbers = #tpu.dot_dimension_numbers<[1], [1], [0], [0], [0, 0, 1, 0], [], []>} : vector<8x8xf32>, vector<8x8xf32>, vector<8x8xf32> -> vector<8x8xf32>
    %20 = vector.broadcast %13 : vector<1x8xf32> to vector<8x8xf32>
    %21 = arith.addf %19, %20 : vector<8x8xf32>
    %cst_11 = arith.constant dense<0xFF800000> : vector<8xf32>
    %22 = vector.multi_reduction <maximumf>, %21, %cst_11 [1] : vector<8x8xf32> to vector<8xf32>
    %23 = vector.shape_cast %22 : vector<8xf32> to vector<8x1xf32>
    %24 = vector.broadcast %23 : vector<8x1xf32> to vector<8x8xf32>
    %25 = arith.subf %21, %24 : vector<8x8xf32>
    %26 = math.exp %25 : vector<8x8xf32>
    %cst_12 = arith.constant dense<0.000000e+00> : vector<8xf32>
    %27 = vector.multi_reduction <add>, %26, %cst_12 [1] : vector<8x8xf32> to vector<8xf32>
    %28 = vector.shape_cast %27 : vector<8xf32> to vector<8x1xf32>
    %29 = vector.broadcast %28 : vector<8x1xf32> to vector<8x8xf32>
    %30 = arith.divf %26, %29 : vector<8x8xf32>
    %31 = vector.extract_strided_slice %16 {offsets = [0, 0], sizes = [8, 8], strides = [1, 1]} : vector<8x32xf32> to vector<8x8xf32>
    %cst_13 = arith.constant dense<0.000000e+00> : vector<8x8xf32>
    %32 = tpu.matmul %30, %31, %cst_13 {dimension_numbers = #tpu.dot_dimension_numbers<[1], [0], [0], [1], [0, 0, 1, 1], [], []>} : vector<8x8xf32>, vector<8x8xf32>, vector<8x8xf32> -> vector<8x8xf32>
    %33 = vector.extract_strided_slice %14 {offsets = [0, 8], sizes = [8, 8], strides = [1, 1]} : vector<8x32xf32> to vector<8x8xf32>
    %34 = vector.extract_strided_slice %15 {offsets = [0, 8], sizes = [8, 8], strides = [1, 1]} : vector<8x32xf32> to vector<8x8xf32>
    %cst_14 = arith.constant dense<0.000000e+00> : vector<8x8xf32>
    %35 = tpu.matmul %33, %34, %cst_14 {dimension_numbers = #tpu.dot_dimension_numbers<[1], [1], [0], [0], [0, 0, 1, 0], [], []>} : vector<8x8xf32>, vector<8x8xf32>, vector<8x8xf32> -> vector<8x8xf32>
    %36 = vector.broadcast %13 : vector<1x8xf32> to vector<8x8xf32>
    %37 = arith.addf %35, %36 : vector<8x8xf32>
    %cst_15 = arith.constant dense<0xFF800000> : vector<8xf32>
    %38 = vector.multi_reduction <maximumf>, %37, %cst_15 [1] : vector<8x8xf32> to vector<8xf32>
    %39 = vector.shape_cast %38 : vector<8xf32> to vector<8x1xf32>
    %40 = vector.broadcast %39 : vector<8x1xf32> to vector<8x8xf32>
    %41 = arith.subf %37, %40 : vector<8x8xf32>
    %42 = math.exp %41 : vector<8x8xf32>
    %cst_16 = arith.constant dense<0.000000e+00> : vector<8xf32>
    %43 = vector.multi_reduction <add>, %42, %cst_16 [1] : vector<8x8xf32> to vector<8xf32>
    %44 = vector.shape_cast %43 : vector<8xf32> to vector<8x1xf32>
    %45 = vector.broadcast %44 : vector<8x1xf32> to vector<8x8xf32>
    %46 = arith.divf %42, %45 : vector<8x8xf32>
    %47 = vector.extract_strided_slice %16 {offsets = [0, 8], sizes = [8, 8], strides = [1, 1]} : vector<8x32xf32> to vector<8x8xf32>
    %cst_17 = arith.constant dense<0.000000e+00> : vector<8x8xf32>
    %48 = tpu.matmul %46, %47, %cst_17 {dimension_numbers = #tpu.dot_dimension_numbers<[1], [0], [0], [1], [0, 0, 1, 1], [], []>} : vector<8x8xf32>, vector<8x8xf32>, vector<8x8xf32> -> vector<8x8xf32>
    %49 = vector.extract_strided_slice %14 {offsets = [0, 16], sizes = [8, 8], strides = [1, 1]} : vector<8x32xf32> to vector<8x8xf32>
    %50 = vector.extract_strided_slice %15 {offsets = [0, 16], sizes = [8, 8], strides = [1, 1]} : vector<8x32xf32> to vector<8x8xf32>
    %cst_18 = arith.constant dense<0.000000e+00> : vector<8x8xf32>
    %51 = tpu.matmul %49, %50, %cst_18 {dimension_numbers = #tpu.dot_dimension_numbers<[1], [1], [0], [0], [0, 0, 1, 0], [], []>} : vector<8x8xf32>, vector<8x8xf32>, vector<8x8xf32> -> vector<8x8xf32>
    %52 = vector.broadcast %13 : vector<1x8xf32> to vector<8x8xf32>
    %53 = arith.addf %51, %52 : vector<8x8xf32>
    %cst_19 = arith.constant dense<0xFF800000> : vector<8xf32>
    %54 = vector.multi_reduction <maximumf>, %53, %cst_19 [1] : vector<8x8xf32> to vector<8xf32>
    %55 = vector.shape_cast %54 : vector<8xf32> to vector<8x1xf32>
    %56 = vector.broadcast %55 : vector<8x1xf32> to vector<8x8xf32>
    %57 = arith.subf %53, %56 : vector<8x8xf32>
    %58 = math.exp %57 : vector<8x8xf32>
    %cst_20 = arith.constant dense<0.000000e+00> : vector<8xf32>
    %59 = vector.multi_reduction <add>, %58, %cst_20 [1] : vector<8x8xf32> to vector<8xf32>
    %60 = vector.shape_cast %59 : vector<8xf32> to vector<8x1xf32>
    %61 = vector.broadcast %60 : vector<8x1xf32> to vector<8x8xf32>
    %62 = arith.divf %58, %61 : vector<8x8xf32>
    %63 = vector.extract_strided_slice %16 {offsets = [0, 16], sizes = [8, 8], strides = [1, 1]} : vector<8x32xf32> to vector<8x8xf32>
    %cst_21 = arith.constant dense<0.000000e+00> : vector<8x8xf32>
    %64 = tpu.matmul %62, %63, %cst_21 {dimension_numbers = #tpu.dot_dimension_numbers<[1], [0], [0], [1], [0, 0, 1, 1], [], []>} : vector<8x8xf32>, vector<8x8xf32>, vector<8x8xf32> -> vector<8x8xf32>
    %65 = vector.extract_strided_slice %14 {offsets = [0, 24], sizes = [8, 8], strides = [1, 1]} : vector<8x32xf32> to vector<8x8xf32>
    %66 = vector.extract_strided_slice %15 {offsets = [0, 24], sizes = [8, 8], strides = [1, 1]} : vector<8x32xf32> to vector<8x8xf32>
    %cst_22 = arith.constant dense<0.000000e+00> : vector<8x8xf32>
    %67 = tpu.matmul %65, %66, %cst_22 {dimension_numbers = #tpu.dot_dimension_numbers<[1], [1], [0], [0], [0, 0, 1, 0], [], []>} : vector<8x8xf32>, vector<8x8xf32>, vector<8x8xf32> -> vector<8x8xf32>
    %68 = vector.broadcast %13 : vector<1x8xf32> to vector<8x8xf32>
    %69 = arith.addf %67, %68 : vector<8x8xf32>
    %cst_23 = arith.constant dense<0xFF800000> : vector<8xf32>
    %70 = vector.multi_reduction <maximumf>, %69, %cst_23 [1] : vector<8x8xf32> to vector<8xf32>
    %71 = vector.shape_cast %70 : vector<8xf32> to vector<8x1xf32>
    %72 = vector.broadcast %71 : vector<8x1xf32> to vector<8x8xf32>
    %73 = arith.subf %69, %72 : vector<8x8xf32>
    %74 = math.exp %73 : vector<8x8xf32>
    %cst_24 = arith.constant dense<0.000000e+00> : vector<8xf32>
    %75 = vector.multi_reduction <add>, %74, %cst_24 [1] : vector<8x8xf32> to vector<8xf32>
    %76 = vector.shape_cast %75 : vector<8xf32> to vector<8x1xf32>
    %77 = vector.broadcast %76 : vector<8x1xf32> to vector<8x8xf32>
    %78 = arith.divf %74, %77 : vector<8x8xf32>
    %79 = vector.extract_strided_slice %16 {offsets = [0, 24], sizes = [8, 8], strides = [1, 1]} : vector<8x32xf32> to vector<8x8xf32>
    %cst_25 = arith.constant dense<0.000000e+00> : vector<8x8xf32>
    %80 = tpu.matmul %78, %79, %cst_25 {dimension_numbers = #tpu.dot_dimension_numbers<[1], [0], [0], [1], [0, 0, 1, 1], [], []>} : vector<8x8xf32>, vector<8x8xf32>, vector<8x8xf32> -> vector<8x8xf32>
    %81 = tpu.concatenate %32, %48, %64, %80 in 1 : vector<8x8xf32>, vector<8x8xf32>, vector<8x8xf32>, vector<8x8xf32> -> vector<8x32xf32>
    %c1 = arith.constant 1 : index
    %c0_26 = arith.constant 0 : index
    %82 = vector.load %arg1[%c1, %c0_26] : memref<2x8xf32, #tpu.memory_space<vmem>>, vector<1x8xf32>
    %83 = vector.extract_strided_slice %6 {offsets = [8, 0], sizes = [8, 32], strides = [1, 1]} : vector<16x32xf32> to vector<8x32xf32>
    %84 = vector.extract_strided_slice %7 {offsets = [8, 0], sizes = [8, 32], strides = [1, 1]} : vector<16x32xf32> to vector<8x32xf32>
    %85 = vector.extract_strided_slice %8 {offsets = [8, 0], sizes = [8, 32], strides = [1, 1]} : vector<16x32xf32> to vector<8x32xf32>
    %86 = vector.extract_strided_slice %83 {offsets = [0, 0], sizes = [8, 8], strides = [1, 1]} : vector<8x32xf32> to vector<8x8xf32>
    %87 = vector.extract_strided_slice %84 {offsets = [0, 0], sizes = [8, 8], strides = [1, 1]} : vector<8x32xf32> to vector<8x8xf32>
    %cst_27 = arith.constant dense<0.000000e+00> : vector<8x8xf32>
    %88 = tpu.matmul %86, %87, %cst_27 {dimension_numbers = #tpu.dot_dimension_numbers<[1], [1], [0], [0], [0, 0, 1, 0], [], []>} : vector<8x8xf32>, vector<8x8xf32>, vector<8x8xf32> -> vector<8x8xf32>
    %89 = vector.broadcast %82 : vector<1x8xf32> to vector<8x8xf32>
    %90 = arith.addf %88, %89 : vector<8x8xf32>
    %cst_28 = arith.constant dense<0xFF800000> : vector<8xf32>
    %91 = vector.multi_reduction <maximumf>, %90, %cst_28 [1] : vector<8x8xf32> to vector<8xf32>
    %92 = vector.shape_cast %91 : vector<8xf32> to vector<8x1xf32>
    %93 = vector.broadcast %92 : vector<8x1xf32> to vector<8x8xf32>
    %94 = arith.subf %90, %93 : vector<8x8xf32>
    %95 = math.exp %94 : vector<8x8xf32>
    %cst_29 = arith.constant dense<0.000000e+00> : vector<8xf32>
    %96 = vector.multi_reduction <add>, %95, %cst_29 [1] : vector<8x8xf32> to vector<8xf32>
    %97 = vector.shape_cast %96 : vector<8xf32> to vector<8x1xf32>
    %98 = vector.broadcast %97 : vector<8x1xf32> to vector<8x8xf32>
    %99 = arith.divf %95, %98 : vector<8x8xf32>
    %100 = vector.extract_strided_slice %85 {offsets = [0, 0], sizes = [8, 8], strides = [1, 1]} : vector<8x32xf32> to vector<8x8xf32>
    %cst_30 = arith.constant dense<0.000000e+00> : vector<8x8xf32>
    %101 = tpu.matmul %99, %100, %cst_30 {dimension_numbers = #tpu.dot_dimension_numbers<[1], [0], [0], [1], [0, 0, 1, 1], [], []>} : vector<8x8xf32>, vector<8x8xf32>, vector<8x8xf32> -> vector<8x8xf32>
    %102 = vector.extract_strided_slice %83 {offsets = [0, 8], sizes = [8, 8], strides = [1, 1]} : vector<8x32xf32> to vector<8x8xf32>
    %103 = vector.extract_strided_slice %84 {offsets = [0, 8], sizes = [8, 8], strides = [1, 1]} : vector<8x32xf32> to vector<8x8xf32>
    %cst_31 = arith.constant dense<0.000000e+00> : vector<8x8xf32>
    %104 = tpu.matmul %102, %103, %cst_31 {dimension_numbers = #tpu.dot_dimension_numbers<[1], [1], [0], [0], [0, 0, 1, 0], [], []>} : vector<8x8xf32>, vector<8x8xf32>, vector<8x8xf32> -> vector<8x8xf32>
    %105 = vector.broadcast %82 : vector<1x8xf32> to vector<8x8xf32>
    %106 = arith.addf %104, %105 : vector<8x8xf32>
    %cst_32 = arith.constant dense<0xFF800000> : vector<8xf32>
    %107 = vector.multi_reduction <maximumf>, %106, %cst_32 [1] : vector<8x8xf32> to vector<8xf32>
    %108 = vector.shape_cast %107 : vector<8xf32> to vector<8x1xf32>
    %109 = vector.broadcast %108 : vector<8x1xf32> to vector<8x8xf32>
    %110 = arith.subf %106, %109 : vector<8x8xf32>
    %111 = math.exp %110 : vector<8x8xf32>
    %cst_33 = arith.constant dense<0.000000e+00> : vector<8xf32>
    %112 = vector.multi_reduction <add>, %111, %cst_33 [1] : vector<8x8xf32> to vector<8xf32>
    %113 = vector.shape_cast %112 : vector<8xf32> to vector<8x1xf32>
    %114 = vector.broadcast %113 : vector<8x1xf32> to vector<8x8xf32>
    %115 = arith.divf %111, %114 : vector<8x8xf32>
    %116 = vector.extract_strided_slice %85 {offsets = [0, 8], sizes = [8, 8], strides = [1, 1]} : vector<8x32xf32> to vector<8x8xf32>
    %cst_34 = arith.constant dense<0.000000e+00> : vector<8x8xf32>
    %117 = tpu.matmul %115, %116, %cst_34 {dimension_numbers = #tpu.dot_dimension_numbers<[1], [0], [0], [1], [0, 0, 1, 1], [], []>} : vector<8x8xf32>, vector<8x8xf32>, vector<8x8xf32> -> vector<8x8xf32>
    %118 = vector.extract_strided_slice %83 {offsets = [0, 16], sizes = [8, 8], strides = [1, 1]} : vector<8x32xf32> to vector<8x8xf32>
    %119 = vector.extract_strided_slice %84 {offsets = [0, 16], sizes = [8, 8], strides = [1, 1]} : vector<8x32xf32> to vector<8x8xf32>
    %cst_35 = arith.constant dense<0.000000e+00> : vector<8x8xf32>
    %120 = tpu.matmul %118, %119, %cst_35 {dimension_numbers = #tpu.dot_dimension_numbers<[1], [1], [0], [0], [0, 0, 1, 0], [], []>} : vector<8x8xf32>, vector<8x8xf32>, vector<8x8xf32> -> vector<8x8xf32>
    %121 = vector.broadcast %82 : vector<1x8xf32> to vector<8x8xf32>
    %122 = arith.addf %120, %121 : vector<8x8xf32>
    %cst_36 = arith.constant dense<0xFF800000> : vector<8xf32>
    %123 = vector.multi_reduction <maximumf>, %122, %cst_36 [1] : vector<8x8xf32> to vector<8xf32>
    %124 = vector.shape_cast %123 : vector<8xf32> to vector<8x1xf32>
    %125 = vector.broadcast %124 : vector<8x1xf32> to vector<8x8xf32>
    %126 = arith.subf %122, %125 : vector<8x8xf32>
    %127 = math.exp %126 : vector<8x8xf32>
    %cst_37 = arith.constant dense<0.000000e+00> : vector<8xf32>
    %128 = vector.multi_reduction <add>, %127, %cst_37 [1] : vector<8x8xf32> to vector<8xf32>
    %129 = vector.shape_cast %128 : vector<8xf32> to vector<8x1xf32>
    %130 = vector.broadcast %129 : vector<8x1xf32> to vector<8x8xf32>
    %131 = arith.divf %127, %130 : vector<8x8xf32>
    %132 = vector.extract_strided_slice %85 {offsets = [0, 16], sizes = [8, 8], strides = [1, 1]} : vector<8x32xf32> to vector<8x8xf32>
    %cst_38 = arith.constant dense<0.000000e+00> : vector<8x8xf32>
    %133 = tpu.matmul %131, %132, %cst_38 {dimension_numbers = #tpu.dot_dimension_numbers<[1], [0], [0], [1], [0, 0, 1, 1], [], []>} : vector<8x8xf32>, vector<8x8xf32>, vector<8x8xf32> -> vector<8x8xf32>
    %134 = vector.extract_strided_slice %83 {offsets = [0, 24], sizes = [8, 8], strides = [1, 1]} : vector<8x32xf32> to vector<8x8xf32>
    %135 = vector.extract_strided_slice %84 {offsets = [0, 24], sizes = [8, 8], strides = [1, 1]} : vector<8x32xf32> to vector<8x8xf32>
    %cst_39 = arith.constant dense<0.000000e+00> : vector<8x8xf32>
    %136 = tpu.matmul %134, %135, %cst_39 {dimension_numbers = #tpu.dot_dimension_numbers<[1], [1], [0], [0], [0, 0, 1, 0], [], []>} : vector<8x8xf32>, vector<8x8xf32>, vector<8x8xf32> -> vector<8x8xf32>
    %137 = vector.broadcast %82 : vector<1x8xf32> to vector<8x8xf32>
    %138 = arith.addf %136, %137 : vector<8x8xf32>
    %cst_40 = arith.constant dense<0xFF800000> : vector<8xf32>
    %139 = vector.multi_reduction <maximumf>, %138, %cst_40 [1] : vector<8x8xf32> to vector<8xf32>
    %140 = vector.shape_cast %139 : vector<8xf32> to vector<8x1xf32>
    %141 = vector.broadcast %140 : vector<8x1xf32> to vector<8x8xf32>
    %142 = arith.subf %138, %141 : vector<8x8xf32>
    %143 = math.exp %142 : vector<8x8xf32>
    %cst_41 = arith.constant dense<0.000000e+00> : vector<8xf32>
    %144 = vector.multi_reduction <add>, %143, %cst_41 [1] : vector<8x8xf32> to vector<8xf32>
    %145 = vector.shape_cast %144 : vector<8xf32> to vector<8x1xf32>
    %146 = vector.broadcast %145 : vector<8x1xf32> to vector<8x8xf32>
    %147 = arith.divf %143, %146 : vector<8x8xf32>
    %148 = vector.extract_strided_slice %85 {offsets = [0, 24], sizes = [8, 8], strides = [1, 1]} : vector<8x32xf32> to vector<8x8xf32>
    %cst_42 = arith.constant dense<0.000000e+00> : vector<8x8xf32>
    %149 = tpu.matmul %147, %148, %cst_42 {dimension_numbers = #tpu.dot_dimension_numbers<[1], [0], [0], [1], [0, 0, 1, 1], [], []>} : vector<8x8xf32>, vector<8x8xf32>, vector<8x8xf32> -> vector<8x8xf32>
    %150 = tpu.concatenate %101, %117, %133, %149 in 1 : vector<8x8xf32>, vector<8x8xf32>, vector<8x8xf32>, vector<8x8xf32> -> vector<8x32xf32>
    %151 = tpu.concatenate %81, %150 in 0 : vector<8x32xf32>, vector<8x32xf32> -> vector<16x32xf32>
    %cst_43 = arith.constant dense<0.000000e+00> : vector<16x32xf32>
    %152 = tpu.matmul %151, %9, %cst_43 {dimension_numbers = #tpu.dot_dimension_numbers<[1], [0], [0], [1], [0, 0, 1, 1], [], []>} : vector<16x32xf32>, vector<32x32xf32>, vector<16x32xf32> -> vector<16x32xf32>
    %153 = vector.broadcast %10 : vector<1x32xf32> to vector<16x32xf32>
    %154 = arith.addf %152, %153 : vector<16x32xf32>
    %155 = arith.addf %154, %0 : vector<16x32xf32>
    %cst_44 = arith.constant dense<0.000000e+00> : vector<16xf32>
    %156 = vector.multi_reduction <add>, %155, %cst_44 [1] : vector<16x32xf32> to vector<16xf32>
    %157 = vector.shape_cast %156 : vector<16xf32> to vector<16x1xf32>
    %cst_45 = arith.constant 3.200000e+01 : f32
    %158 = vector.broadcast %cst_45 : f32 to vector<16x1xf32>
    %159 = arith.divf %157, %158 : vector<16x1xf32>
    %160 = vector.broadcast %159 : vector<16x1xf32> to vector<16x32xf32>
    %161 = arith.subf %155, %160 : vector<16x32xf32>
    %162 = arith.mulf %161, %161 : vector<16x32xf32>
    %cst_46 = arith.constant dense<0.000000e+00> : vector<16xf32>
    %163 = vector.multi_reduction <add>, %162, %cst_46 [1] : vector<16x32xf32> to vector<16xf32>
    %164 = vector.shape_cast %163 : vector<16xf32> to vector<16x1xf32>
    %cst_47 = arith.constant 3.200000e+01 : f32
    %165 = vector.broadcast %cst_47 : f32 to vector<16x1xf32>
    %166 = arith.divf %164, %165 : vector<16x1xf32>
    %167 = vector.broadcast %159 : vector<16x1xf32> to vector<16x32xf32>
    %168 = arith.subf %155, %167 : vector<16x32xf32>
    %cst_48 = arith.constant 9.99999996E-13 : f32
    %169 = vector.broadcast %cst_48 : f32 to vector<16x1xf32>
    %170 = arith.addf %166, %169 : vector<16x1xf32>
    %171 = math.rsqrt %170 : vector<16x1xf32>
    %172 = vector.broadcast %171 : vector<16x1xf32> to vector<16x32xf32>
    %173 = arith.mulf %168, %172 : vector<16x32xf32>
    %174 = vector.broadcast %11 : vector<1x32xf32> to vector<16x32xf32>
    %175 = arith.mulf %173, %174 : vector<16x32xf32>
    %176 = vector.broadcast %12 : vector<1x32xf32> to vector<16x32xf32>
    %177 = arith.addf %175, %176 : vector<16x32xf32>
    %c64 = arith.constant 64 : index
    %c0_49 = arith.constant 0 : index
    %178 = vector.load %arg4[%c64, %c0_49] : memref<272x128xf32, #tpu.memory_space<vmem>>, vector<32x32xf32>
    %cst_50 = arith.constant dense<0.000000e+00> : vector<16x32xf32>
    %179 = tpu.matmul %177, %178, %cst_50 {dimension_numbers = #tpu.dot_dimension_numbers<[1], [0], [0], [1], [0, 0, 1, 1], [], []>} : vector<16x32xf32>, vector<32x32xf32>, vector<16x32xf32> -> vector<16x32xf32>
    %c260 = arith.constant 260 : index
    %c0_51 = arith.constant 0 : index
    %180 = vector.load %arg4[%c260, %c0_51] : memref<272x128xf32, #tpu.memory_space<vmem>>, vector<1x32xf32>
    %181 = vector.broadcast %180 : vector<1x32xf32> to vector<16x32xf32>
    %182 = arith.addf %179, %181 : vector<16x32xf32>
    %c0_52 = arith.constant 0 : index
    %c0_53 = arith.constant 0 : index
    %183 = vector.load %arg2[%c0_52, %c0_53] : memref<16x32xf32, #tpu.memory_space<vmem>>, vector<16x32xf32>
    %c96 = arith.constant 96 : index
    %c0_54 = arith.constant 0 : index
    %184 = vector.load %arg4[%c96, %c0_54] : memref<272x128xf32, #tpu.memory_space<vmem>>, vector<32x64xf32>
    %cst_55 = arith.constant dense<0.000000e+00> : vector<16x64xf32>
    %185 = tpu.matmul %183, %184, %cst_55 {dimension_numbers = #tpu.dot_dimension_numbers<[1], [0], [0], [1], [0, 0, 1, 1], [], []>} : vector<16x32xf32>, vector<32x64xf32>, vector<16x64xf32> -> vector<16x64xf32>
    %c261 = arith.constant 261 : index
    %c0_56 = arith.constant 0 : index
    %186 = vector.load %arg4[%c261, %c0_56] : memref<272x128xf32, #tpu.memory_space<vmem>>, vector<1x64xf32>
    %187 = vector.broadcast %186 : vector<1x64xf32> to vector<16x64xf32>
    %188 = arith.addf %185, %187 : vector<16x64xf32>
    %189 = vector.extract_strided_slice %188 {offsets = [0, 0], sizes = [16, 32], strides = [1, 1]} : vector<16x64xf32> to vector<16x32xf32>
    %190 = vector.extract_strided_slice %188 {offsets = [0, 32], sizes = [16, 32], strides = [1, 1]} : vector<16x64xf32> to vector<16x32xf32>
    %c128 = arith.constant 128 : index
    %c0_57 = arith.constant 0 : index
    %191 = vector.load %arg4[%c128, %c0_57] : memref<272x128xf32, #tpu.memory_space<vmem>>, vector<32x32xf32>
    %c262 = arith.constant 262 : index
    %c0_58 = arith.constant 0 : index
    %192 = vector.load %arg4[%c262, %c0_58] : memref<272x128xf32, #tpu.memory_space<vmem>>, vector<1x32xf32>
    %c263 = arith.constant 263 : index
    %c0_59 = arith.constant 0 : index
    %193 = vector.load %arg4[%c263, %c0_59] : memref<272x128xf32, #tpu.memory_space<vmem>>, vector<1x32xf32>
    %c264 = arith.constant 264 : index
    %c0_60 = arith.constant 0 : index
    %194 = vector.load %arg4[%c264, %c0_60] : memref<272x128xf32, #tpu.memory_space<vmem>>, vector<1x32xf32>
    %c0_61 = arith.constant 0 : index
    %c0_62 = arith.constant 0 : index
    %195 = vector.load %arg3[%c0_61, %c0_62] : memref<2x8xf32, #tpu.memory_space<vmem>>, vector<1x8xf32>
    %196 = vector.extract_strided_slice %182 {offsets = [0, 0], sizes = [8, 32], strides = [1, 1]} : vector<16x32xf32> to vector<8x32xf32>
    %197 = vector.extract_strided_slice %189 {offsets = [0, 0], sizes = [8, 32], strides = [1, 1]} : vector<16x32xf32> to vector<8x32xf32>
    %198 = vector.extract_strided_slice %190 {offsets = [0, 0], sizes = [8, 32], strides = [1, 1]} : vector<16x32xf32> to vector<8x32xf32>
    %199 = vector.extract_strided_slice %196 {offsets = [0, 0], sizes = [8, 8], strides = [1, 1]} : vector<8x32xf32> to vector<8x8xf32>
    %200 = vector.extract_strided_slice %197 {offsets = [0, 0], sizes = [8, 8], strides = [1, 1]} : vector<8x32xf32> to vector<8x8xf32>
    %cst_63 = arith.constant dense<0.000000e+00> : vector<8x8xf32>
    %201 = tpu.matmul %199, %200, %cst_63 {dimension_numbers = #tpu.dot_dimension_numbers<[1], [1], [0], [0], [0, 0, 1, 0], [], []>} : vector<8x8xf32>, vector<8x8xf32>, vector<8x8xf32> -> vector<8x8xf32>
    %202 = vector.broadcast %195 : vector<1x8xf32> to vector<8x8xf32>
    %203 = arith.addf %201, %202 : vector<8x8xf32>
    %cst_64 = arith.constant dense<0xFF800000> : vector<8xf32>
    %204 = vector.multi_reduction <maximumf>, %203, %cst_64 [1] : vector<8x8xf32> to vector<8xf32>
    %205 = vector.shape_cast %204 : vector<8xf32> to vector<8x1xf32>
    %206 = vector.broadcast %205 : vector<8x1xf32> to vector<8x8xf32>
    %207 = arith.subf %203, %206 : vector<8x8xf32>
    %208 = math.exp %207 : vector<8x8xf32>
    %cst_65 = arith.constant dense<0.000000e+00> : vector<8xf32>
    %209 = vector.multi_reduction <add>, %208, %cst_65 [1] : vector<8x8xf32> to vector<8xf32>
    %210 = vector.shape_cast %209 : vector<8xf32> to vector<8x1xf32>
    %211 = vector.broadcast %210 : vector<8x1xf32> to vector<8x8xf32>
    %212 = arith.divf %208, %211 : vector<8x8xf32>
    %213 = vector.extract_strided_slice %198 {offsets = [0, 0], sizes = [8, 8], strides = [1, 1]} : vector<8x32xf32> to vector<8x8xf32>
    %cst_66 = arith.constant dense<0.000000e+00> : vector<8x8xf32>
    %214 = tpu.matmul %212, %213, %cst_66 {dimension_numbers = #tpu.dot_dimension_numbers<[1], [0], [0], [1], [0, 0, 1, 1], [], []>} : vector<8x8xf32>, vector<8x8xf32>, vector<8x8xf32> -> vector<8x8xf32>
    %215 = vector.extract_strided_slice %196 {offsets = [0, 8], sizes = [8, 8], strides = [1, 1]} : vector<8x32xf32> to vector<8x8xf32>
    %216 = vector.extract_strided_slice %197 {offsets = [0, 8], sizes = [8, 8], strides = [1, 1]} : vector<8x32xf32> to vector<8x8xf32>
    %cst_67 = arith.constant dense<0.000000e+00> : vector<8x8xf32>
    %217 = tpu.matmul %215, %216, %cst_67 {dimension_numbers = #tpu.dot_dimension_numbers<[1], [1], [0], [0], [0, 0, 1, 0], [], []>} : vector<8x8xf32>, vector<8x8xf32>, vector<8x8xf32> -> vector<8x8xf32>
    %218 = vector.broadcast %195 : vector<1x8xf32> to vector<8x8xf32>
    %219 = arith.addf %217, %218 : vector<8x8xf32>
    %cst_68 = arith.constant dense<0xFF800000> : vector<8xf32>
    %220 = vector.multi_reduction <maximumf>, %219, %cst_68 [1] : vector<8x8xf32> to vector<8xf32>
    %221 = vector.shape_cast %220 : vector<8xf32> to vector<8x1xf32>
    %222 = vector.broadcast %221 : vector<8x1xf32> to vector<8x8xf32>
    %223 = arith.subf %219, %222 : vector<8x8xf32>
    %224 = math.exp %223 : vector<8x8xf32>
    %cst_69 = arith.constant dense<0.000000e+00> : vector<8xf32>
    %225 = vector.multi_reduction <add>, %224, %cst_69 [1] : vector<8x8xf32> to vector<8xf32>
    %226 = vector.shape_cast %225 : vector<8xf32> to vector<8x1xf32>
    %227 = vector.broadcast %226 : vector<8x1xf32> to vector<8x8xf32>
    %228 = arith.divf %224, %227 : vector<8x8xf32>
    %229 = vector.extract_strided_slice %198 {offsets = [0, 8], sizes = [8, 8], strides = [1, 1]} : vector<8x32xf32> to vector<8x8xf32>
    %cst_70 = arith.constant dense<0.000000e+00> : vector<8x8xf32>
    %230 = tpu.matmul %228, %229, %cst_70 {dimension_numbers = #tpu.dot_dimension_numbers<[1], [0], [0], [1], [0, 0, 1, 1], [], []>} : vector<8x8xf32>, vector<8x8xf32>, vector<8x8xf32> -> vector<8x8xf32>
    %231 = vector.extract_strided_slice %196 {offsets = [0, 16], sizes = [8, 8], strides = [1, 1]} : vector<8x32xf32> to vector<8x8xf32>
    %232 = vector.extract_strided_slice %197 {offsets = [0, 16], sizes = [8, 8], strides = [1, 1]} : vector<8x32xf32> to vector<8x8xf32>
    %cst_71 = arith.constant dense<0.000000e+00> : vector<8x8xf32>
    %233 = tpu.matmul %231, %232, %cst_71 {dimension_numbers = #tpu.dot_dimension_numbers<[1], [1], [0], [0], [0, 0, 1, 0], [], []>} : vector<8x8xf32>, vector<8x8xf32>, vector<8x8xf32> -> vector<8x8xf32>
    %234 = vector.broadcast %195 : vector<1x8xf32> to vector<8x8xf32>
    %235 = arith.addf %233, %234 : vector<8x8xf32>
    %cst_72 = arith.constant dense<0xFF800000> : vector<8xf32>
    %236 = vector.multi_reduction <maximumf>, %235, %cst_72 [1] : vector<8x8xf32> to vector<8xf32>
    %237 = vector.shape_cast %236 : vector<8xf32> to vector<8x1xf32>
    %238 = vector.broadcast %237 : vector<8x1xf32> to vector<8x8xf32>
    %239 = arith.subf %235, %238 : vector<8x8xf32>
    %240 = math.exp %239 : vector<8x8xf32>
    %cst_73 = arith.constant dense<0.000000e+00> : vector<8xf32>
    %241 = vector.multi_reduction <add>, %240, %cst_73 [1] : vector<8x8xf32> to vector<8xf32>
    %242 = vector.shape_cast %241 : vector<8xf32> to vector<8x1xf32>
    %243 = vector.broadcast %242 : vector<8x1xf32> to vector<8x8xf32>
    %244 = arith.divf %240, %243 : vector<8x8xf32>
    %245 = vector.extract_strided_slice %198 {offsets = [0, 16], sizes = [8, 8], strides = [1, 1]} : vector<8x32xf32> to vector<8x8xf32>
    %cst_74 = arith.constant dense<0.000000e+00> : vector<8x8xf32>
    %246 = tpu.matmul %244, %245, %cst_74 {dimension_numbers = #tpu.dot_dimension_numbers<[1], [0], [0], [1], [0, 0, 1, 1], [], []>} : vector<8x8xf32>, vector<8x8xf32>, vector<8x8xf32> -> vector<8x8xf32>
    %247 = vector.extract_strided_slice %196 {offsets = [0, 24], sizes = [8, 8], strides = [1, 1]} : vector<8x32xf32> to vector<8x8xf32>
    %248 = vector.extract_strided_slice %197 {offsets = [0, 24], sizes = [8, 8], strides = [1, 1]} : vector<8x32xf32> to vector<8x8xf32>
    %cst_75 = arith.constant dense<0.000000e+00> : vector<8x8xf32>
    %249 = tpu.matmul %247, %248, %cst_75 {dimension_numbers = #tpu.dot_dimension_numbers<[1], [1], [0], [0], [0, 0, 1, 0], [], []>} : vector<8x8xf32>, vector<8x8xf32>, vector<8x8xf32> -> vector<8x8xf32>
    %250 = vector.broadcast %195 : vector<1x8xf32> to vector<8x8xf32>
    %251 = arith.addf %249, %250 : vector<8x8xf32>
    %cst_76 = arith.constant dense<0xFF800000> : vector<8xf32>
    %252 = vector.multi_reduction <maximumf>, %251, %cst_76 [1] : vector<8x8xf32> to vector<8xf32>
    %253 = vector.shape_cast %252 : vector<8xf32> to vector<8x1xf32>
    %254 = vector.broadcast %253 : vector<8x1xf32> to vector<8x8xf32>
    %255 = arith.subf %251, %254 : vector<8x8xf32>
    %256 = math.exp %255 : vector<8x8xf32>
    %cst_77 = arith.constant dense<0.000000e+00> : vector<8xf32>
    %257 = vector.multi_reduction <add>, %256, %cst_77 [1] : vector<8x8xf32> to vector<8xf32>
    %258 = vector.shape_cast %257 : vector<8xf32> to vector<8x1xf32>
    %259 = vector.broadcast %258 : vector<8x1xf32> to vector<8x8xf32>
    %260 = arith.divf %256, %259 : vector<8x8xf32>
    %261 = vector.extract_strided_slice %198 {offsets = [0, 24], sizes = [8, 8], strides = [1, 1]} : vector<8x32xf32> to vector<8x8xf32>
    %cst_78 = arith.constant dense<0.000000e+00> : vector<8x8xf32>
    %262 = tpu.matmul %260, %261, %cst_78 {dimension_numbers = #tpu.dot_dimension_numbers<[1], [0], [0], [1], [0, 0, 1, 1], [], []>} : vector<8x8xf32>, vector<8x8xf32>, vector<8x8xf32> -> vector<8x8xf32>
    %263 = tpu.concatenate %214, %230, %246, %262 in 1 : vector<8x8xf32>, vector<8x8xf32>, vector<8x8xf32>, vector<8x8xf32> -> vector<8x32xf32>
    %c1_79 = arith.constant 1 : index
    %c0_80 = arith.constant 0 : index
    %264 = vector.load %arg3[%c1_79, %c0_80] : memref<2x8xf32, #tpu.memory_space<vmem>>, vector<1x8xf32>
    %265 = vector.extract_strided_slice %182 {offsets = [8, 0], sizes = [8, 32], strides = [1, 1]} : vector<16x32xf32> to vector<8x32xf32>
    %266 = vector.extract_strided_slice %189 {offsets = [8, 0], sizes = [8, 32], strides = [1, 1]} : vector<16x32xf32> to vector<8x32xf32>
    %267 = vector.extract_strided_slice %190 {offsets = [8, 0], sizes = [8, 32], strides = [1, 1]} : vector<16x32xf32> to vector<8x32xf32>
    %268 = vector.extract_strided_slice %265 {offsets = [0, 0], sizes = [8, 8], strides = [1, 1]} : vector<8x32xf32> to vector<8x8xf32>
    %269 = vector.extract_strided_slice %266 {offsets = [0, 0], sizes = [8, 8], strides = [1, 1]} : vector<8x32xf32> to vector<8x8xf32>
    %cst_81 = arith.constant dense<0.000000e+00> : vector<8x8xf32>
    %270 = tpu.matmul %268, %269, %cst_81 {dimension_numbers = #tpu.dot_dimension_numbers<[1], [1], [0], [0], [0, 0, 1, 0], [], []>} : vector<8x8xf32>, vector<8x8xf32>, vector<8x8xf32> -> vector<8x8xf32>
    %271 = vector.broadcast %264 : vector<1x8xf32> to vector<8x8xf32>
    %272 = arith.addf %270, %271 : vector<8x8xf32>
    %cst_82 = arith.constant dense<0xFF800000> : vector<8xf32>
    %273 = vector.multi_reduction <maximumf>, %272, %cst_82 [1] : vector<8x8xf32> to vector<8xf32>
    %274 = vector.shape_cast %273 : vector<8xf32> to vector<8x1xf32>
    %275 = vector.broadcast %274 : vector<8x1xf32> to vector<8x8xf32>
    %276 = arith.subf %272, %275 : vector<8x8xf32>
    %277 = math.exp %276 : vector<8x8xf32>
    %cst_83 = arith.constant dense<0.000000e+00> : vector<8xf32>
    %278 = vector.multi_reduction <add>, %277, %cst_83 [1] : vector<8x8xf32> to vector<8xf32>
    %279 = vector.shape_cast %278 : vector<8xf32> to vector<8x1xf32>
    %280 = vector.broadcast %279 : vector<8x1xf32> to vector<8x8xf32>
    %281 = arith.divf %277, %280 : vector<8x8xf32>
    %282 = vector.extract_strided_slice %267 {offsets = [0, 0], sizes = [8, 8], strides = [1, 1]} : vector<8x32xf32> to vector<8x8xf32>
    %cst_84 = arith.constant dense<0.000000e+00> : vector<8x8xf32>
    %283 = tpu.matmul %281, %282, %cst_84 {dimension_numbers = #tpu.dot_dimension_numbers<[1], [0], [0], [1], [0, 0, 1, 1], [], []>} : vector<8x8xf32>, vector<8x8xf32>, vector<8x8xf32> -> vector<8x8xf32>
    %284 = vector.extract_strided_slice %265 {offsets = [0, 8], sizes = [8, 8], strides = [1, 1]} : vector<8x32xf32> to vector<8x8xf32>
    %285 = vector.extract_strided_slice %266 {offsets = [0, 8], sizes = [8, 8], strides = [1, 1]} : vector<8x32xf32> to vector<8x8xf32>
    %cst_85 = arith.constant dense<0.000000e+00> : vector<8x8xf32>
    %286 = tpu.matmul %284, %285, %cst_85 {dimension_numbers = #tpu.dot_dimension_numbers<[1], [1], [0], [0], [0, 0, 1, 0], [], []>} : vector<8x8xf32>, vector<8x8xf32>, vector<8x8xf32> -> vector<8x8xf32>
    %287 = vector.broadcast %264 : vector<1x8xf32> to vector<8x8xf32>
    %288 = arith.addf %286, %287 : vector<8x8xf32>
    %cst_86 = arith.constant dense<0xFF800000> : vector<8xf32>
    %289 = vector.multi_reduction <maximumf>, %288, %cst_86 [1] : vector<8x8xf32> to vector<8xf32>
    %290 = vector.shape_cast %289 : vector<8xf32> to vector<8x1xf32>
    %291 = vector.broadcast %290 : vector<8x1xf32> to vector<8x8xf32>
    %292 = arith.subf %288, %291 : vector<8x8xf32>
    %293 = math.exp %292 : vector<8x8xf32>
    %cst_87 = arith.constant dense<0.000000e+00> : vector<8xf32>
    %294 = vector.multi_reduction <add>, %293, %cst_87 [1] : vector<8x8xf32> to vector<8xf32>
    %295 = vector.shape_cast %294 : vector<8xf32> to vector<8x1xf32>
    %296 = vector.broadcast %295 : vector<8x1xf32> to vector<8x8xf32>
    %297 = arith.divf %293, %296 : vector<8x8xf32>
    %298 = vector.extract_strided_slice %267 {offsets = [0, 8], sizes = [8, 8], strides = [1, 1]} : vector<8x32xf32> to vector<8x8xf32>
    %cst_88 = arith.constant dense<0.000000e+00> : vector<8x8xf32>
    %299 = tpu.matmul %297, %298, %cst_88 {dimension_numbers = #tpu.dot_dimension_numbers<[1], [0], [0], [1], [0, 0, 1, 1], [], []>} : vector<8x8xf32>, vector<8x8xf32>, vector<8x8xf32> -> vector<8x8xf32>
    %300 = vector.extract_strided_slice %265 {offsets = [0, 16], sizes = [8, 8], strides = [1, 1]} : vector<8x32xf32> to vector<8x8xf32>
    %301 = vector.extract_strided_slice %266 {offsets = [0, 16], sizes = [8, 8], strides = [1, 1]} : vector<8x32xf32> to vector<8x8xf32>
    %cst_89 = arith.constant dense<0.000000e+00> : vector<8x8xf32>
    %302 = tpu.matmul %300, %301, %cst_89 {dimension_numbers = #tpu.dot_dimension_numbers<[1], [1], [0], [0], [0, 0, 1, 0], [], []>} : vector<8x8xf32>, vector<8x8xf32>, vector<8x8xf32> -> vector<8x8xf32>
    %303 = vector.broadcast %264 : vector<1x8xf32> to vector<8x8xf32>
    %304 = arith.addf %302, %303 : vector<8x8xf32>
    %cst_90 = arith.constant dense<0xFF800000> : vector<8xf32>
    %305 = vector.multi_reduction <maximumf>, %304, %cst_90 [1] : vector<8x8xf32> to vector<8xf32>
    %306 = vector.shape_cast %305 : vector<8xf32> to vector<8x1xf32>
    %307 = vector.broadcast %306 : vector<8x1xf32> to vector<8x8xf32>
    %308 = arith.subf %304, %307 : vector<8x8xf32>
    %309 = math.exp %308 : vector<8x8xf32>
    %cst_91 = arith.constant dense<0.000000e+00> : vector<8xf32>
    %310 = vector.multi_reduction <add>, %309, %cst_91 [1] : vector<8x8xf32> to vector<8xf32>
    %311 = vector.shape_cast %310 : vector<8xf32> to vector<8x1xf32>
    %312 = vector.broadcast %311 : vector<8x1xf32> to vector<8x8xf32>
    %313 = arith.divf %309, %312 : vector<8x8xf32>
    %314 = vector.extract_strided_slice %267 {offsets = [0, 16], sizes = [8, 8], strides = [1, 1]} : vector<8x32xf32> to vector<8x8xf32>
    %cst_92 = arith.constant dense<0.000000e+00> : vector<8x8xf32>
    %315 = tpu.matmul %313, %314, %cst_92 {dimension_numbers = #tpu.dot_dimension_numbers<[1], [0], [0], [1], [0, 0, 1, 1], [], []>} : vector<8x8xf32>, vector<8x8xf32>, vector<8x8xf32> -> vector<8x8xf32>
    %316 = vector.extract_strided_slice %265 {offsets = [0, 24], sizes = [8, 8], strides = [1, 1]} : vector<8x32xf32> to vector<8x8xf32>
    %317 = vector.extract_strided_slice %266 {offsets = [0, 24], sizes = [8, 8], strides = [1, 1]} : vector<8x32xf32> to vector<8x8xf32>
    %cst_93 = arith.constant dense<0.000000e+00> : vector<8x8xf32>
    %318 = tpu.matmul %316, %317, %cst_93 {dimension_numbers = #tpu.dot_dimension_numbers<[1], [1], [0], [0], [0, 0, 1, 0], [], []>} : vector<8x8xf32>, vector<8x8xf32>, vector<8x8xf32> -> vector<8x8xf32>
    %319 = vector.broadcast %264 : vector<1x8xf32> to vector<8x8xf32>
    %320 = arith.addf %318, %319 : vector<8x8xf32>
    %cst_94 = arith.constant dense<0xFF800000> : vector<8xf32>
    %321 = vector.multi_reduction <maximumf>, %320, %cst_94 [1] : vector<8x8xf32> to vector<8xf32>
    %322 = vector.shape_cast %321 : vector<8xf32> to vector<8x1xf32>
    %323 = vector.broadcast %322 : vector<8x1xf32> to vector<8x8xf32>
    %324 = arith.subf %320, %323 : vector<8x8xf32>
    %325 = math.exp %324 : vector<8x8xf32>
    %cst_95 = arith.constant dense<0.000000e+00> : vector<8xf32>
    %326 = vector.multi_reduction <add>, %325, %cst_95 [1] : vector<8x8xf32> to vector<8xf32>
    %327 = vector.shape_cast %326 : vector<8xf32> to vector<8x1xf32>
    %328 = vector.broadcast %327 : vector<8x1xf32> to vector<8x8xf32>
    %329 = arith.divf %325, %328 : vector<8x8xf32>
    %330 = vector.extract_strided_slice %267 {offsets = [0, 24], sizes = [8, 8], strides = [1, 1]} : vector<8x32xf32> to vector<8x8xf32>
    %cst_96 = arith.constant dense<0.000000e+00> : vector<8x8xf32>
    %331 = tpu.matmul %329, %330, %cst_96 {dimension_numbers = #tpu.dot_dimension_numbers<[1], [0], [0], [1], [0, 0, 1, 1], [], []>} : vector<8x8xf32>, vector<8x8xf32>, vector<8x8xf32> -> vector<8x8xf32>
    %332 = tpu.concatenate %283, %299, %315, %331 in 1 : vector<8x8xf32>, vector<8x8xf32>, vector<8x8xf32>, vector<8x8xf32> -> vector<8x32xf32>
    %333 = tpu.concatenate %263, %332 in 0 : vector<8x32xf32>, vector<8x32xf32> -> vector<16x32xf32>
    %cst_97 = arith.constant dense<0.000000e+00> : vector<16x32xf32>
    %334 = tpu.matmul %333, %191, %cst_97 {dimension_numbers = #tpu.dot_dimension_numbers<[1], [0], [0], [1], [0, 0, 1, 1], [], []>} : vector<16x32xf32>, vector<32x32xf32>, vector<16x32xf32> -> vector<16x32xf32>
    %335 = vector.broadcast %192 : vector<1x32xf32> to vector<16x32xf32>
    %336 = arith.addf %334, %335 : vector<16x32xf32>
    %337 = arith.addf %336, %177 : vector<16x32xf32>
    %cst_98 = arith.constant dense<0.000000e+00> : vector<16xf32>
    %338 = vector.multi_reduction <add>, %337, %cst_98 [1] : vector<16x32xf32> to vector<16xf32>
    %339 = vector.shape_cast %338 : vector<16xf32> to vector<16x1xf32>
    %cst_99 = arith.constant 3.200000e+01 : f32
    %340 = vector.broadcast %cst_99 : f32 to vector<16x1xf32>
    %341 = arith.divf %339, %340 : vector<16x1xf32>
    %342 = vector.broadcast %341 : vector<16x1xf32> to vector<16x32xf32>
    %343 = arith.subf %337, %342 : vector<16x32xf32>
    %344 = arith.mulf %343, %343 : vector<16x32xf32>
    %cst_100 = arith.constant dense<0.000000e+00> : vector<16xf32>
    %345 = vector.multi_reduction <add>, %344, %cst_100 [1] : vector<16x32xf32> to vector<16xf32>
    %346 = vector.shape_cast %345 : vector<16xf32> to vector<16x1xf32>
    %cst_101 = arith.constant 3.200000e+01 : f32
    %347 = vector.broadcast %cst_101 : f32 to vector<16x1xf32>
    %348 = arith.divf %346, %347 : vector<16x1xf32>
    %349 = vector.broadcast %341 : vector<16x1xf32> to vector<16x32xf32>
    %350 = arith.subf %337, %349 : vector<16x32xf32>
    %cst_102 = arith.constant 9.99999996E-13 : f32
    %351 = vector.broadcast %cst_102 : f32 to vector<16x1xf32>
    %352 = arith.addf %348, %351 : vector<16x1xf32>
    %353 = math.rsqrt %352 : vector<16x1xf32>
    %354 = vector.broadcast %353 : vector<16x1xf32> to vector<16x32xf32>
    %355 = arith.mulf %350, %354 : vector<16x32xf32>
    %356 = vector.broadcast %193 : vector<1x32xf32> to vector<16x32xf32>
    %357 = arith.mulf %355, %356 : vector<16x32xf32>
    %358 = vector.broadcast %194 : vector<1x32xf32> to vector<16x32xf32>
    %359 = arith.addf %357, %358 : vector<16x32xf32>
    %c160 = arith.constant 160 : index
    %c0_103 = arith.constant 0 : index
    %360 = vector.load %arg4[%c160, %c0_103] : memref<272x128xf32, #tpu.memory_space<vmem>>, vector<32x64xf32>
    %cst_104 = arith.constant dense<0.000000e+00> : vector<16x64xf32>
    %361 = tpu.matmul %359, %360, %cst_104 {dimension_numbers = #tpu.dot_dimension_numbers<[1], [0], [0], [1], [0, 0, 1, 1], [], []>} : vector<16x32xf32>, vector<32x64xf32>, vector<16x64xf32> -> vector<16x64xf32>
    %c265 = arith.constant 265 : index
    %c0_105 = arith.constant 0 : index
    %362 = vector.load %arg4[%c265, %c0_105] : memref<272x128xf32, #tpu.memory_space<vmem>>, vector<1x64xf32>
    %363 = vector.broadcast %362 : vector<1x64xf32> to vector<16x64xf32>
    %364 = arith.addf %361, %363 : vector<16x64xf32>
    %cst_106 = arith.constant 5.000000e-01 : f32
    %365 = vector.broadcast %cst_106 : f32 to vector<16x64xf32>
    %366 = arith.mulf %365, %364 : vector<16x64xf32>
    %cst_107 = arith.constant 0.707106769 : f32
    %367 = vector.broadcast %cst_107 : f32 to vector<16x64xf32>
    %368 = arith.mulf %364, %367 : vector<16x64xf32>
    %369 = math.erf %368 : vector<16x64xf32>
    %cst_108 = arith.constant 1.000000e+00 : f32
    %370 = vector.broadcast %cst_108 : f32 to vector<16x64xf32>
    %371 = arith.addf %370, %369 : vector<16x64xf32>
    %372 = arith.mulf %366, %371 : vector<16x64xf32>
    %c192 = arith.constant 192 : index
    %c0_109 = arith.constant 0 : index
    %373 = vector.load %arg4[%c192, %c0_109] : memref<272x128xf32, #tpu.memory_space<vmem>>, vector<64x32xf32>
    %cst_110 = arith.constant dense<0.000000e+00> : vector<16x32xf32>
    %374 = tpu.matmul %372, %373, %cst_110 {dimension_numbers = #tpu.dot_dimension_numbers<[1], [0], [0], [1], [0, 0, 1, 1], [], []>} : vector<16x64xf32>, vector<64x32xf32>, vector<16x32xf32> -> vector<16x32xf32>
    %c266 = arith.constant 266 : index
    %c0_111 = arith.constant 0 : index
    %375 = vector.load %arg4[%c266, %c0_111] : memref<272x128xf32, #tpu.memory_space<vmem>>, vector<1x32xf32>
    %376 = vector.broadcast %375 : vector<1x32xf32> to vector<16x32xf32>
    %377 = arith.addf %374, %376 : vector<16x32xf32>
    %378 = arith.addf %377, %359 : vector<16x32xf32>
    %c267 = arith.constant 267 : index
    %c0_112 = arith.constant 0 : index
    %379 = vector.load %arg4[%c267, %c0_112] : memref<272x128xf32, #tpu.memory_space<vmem>>, vector<1x32xf32>
    %c268 = arith.constant 268 : index
    %c0_113 = arith.constant 0 : index
    %380 = vector.load %arg4[%c268, %c0_113] : memref<272x128xf32, #tpu.memory_space<vmem>>, vector<1x32xf32>
    %cst_114 = arith.constant dense<0.000000e+00> : vector<16xf32>
    %381 = vector.multi_reduction <add>, %378, %cst_114 [1] : vector<16x32xf32> to vector<16xf32>
    %382 = vector.shape_cast %381 : vector<16xf32> to vector<16x1xf32>
    %cst_115 = arith.constant 3.200000e+01 : f32
    %383 = vector.broadcast %cst_115 : f32 to vector<16x1xf32>
    %384 = arith.divf %382, %383 : vector<16x1xf32>
    %385 = vector.broadcast %384 : vector<16x1xf32> to vector<16x32xf32>
    %386 = arith.subf %378, %385 : vector<16x32xf32>
    %387 = arith.mulf %386, %386 : vector<16x32xf32>
    %cst_116 = arith.constant dense<0.000000e+00> : vector<16xf32>
    %388 = vector.multi_reduction <add>, %387, %cst_116 [1] : vector<16x32xf32> to vector<16xf32>
    %389 = vector.shape_cast %388 : vector<16xf32> to vector<16x1xf32>
    %cst_117 = arith.constant 3.200000e+01 : f32
    %390 = vector.broadcast %cst_117 : f32 to vector<16x1xf32>
    %391 = arith.divf %389, %390 : vector<16x1xf32>
    %392 = vector.broadcast %384 : vector<16x1xf32> to vector<16x32xf32>
    %393 = arith.subf %378, %392 : vector<16x32xf32>
    %cst_118 = arith.constant 9.99999996E-13 : f32
    %394 = vector.broadcast %cst_118 : f32 to vector<16x1xf32>
    %395 = arith.addf %391, %394 : vector<16x1xf32>
    %396 = math.rsqrt %395 : vector<16x1xf32>
    %397 = vector.broadcast %396 : vector<16x1xf32> to vector<16x32xf32>
    %398 = arith.mulf %393, %397 : vector<16x32xf32>
    %399 = vector.broadcast %379 : vector<1x32xf32> to vector<16x32xf32>
    %400 = arith.mulf %398, %399 : vector<16x32xf32>
    %401 = vector.broadcast %380 : vector<1x32xf32> to vector<16x32xf32>
    %402 = arith.addf %400, %401 : vector<16x32xf32>
    %c0_119 = arith.constant 0 : index
    %c0_120 = arith.constant 0 : index
    %403 = vector.load %arg5[%c0_119, %c0_120] : memref<16x32xf32, #tpu.memory_space<vmem>>, vector<16x32xf32>
    tpu.vector_store %arg5[%c0_119, %c0_120], %402 {strides = array<i32>} : memref<16x32xf32, #tpu.memory_space<vmem>>, vector<16x32xf32>,
    return
  }
}

</mosaic_0001>

<bundles_post_ra>
// kernel: tpu_custom_call.1
= control target key start
LH: loop header
LB: loop body
LE: loop exit
PB: predicated region body
PF: predicated region fallthrough
CT: control target
= control target key end

     0   :  { %10 = vsyncpa [#allocation3], 0  ;;  %s4766_s0 = inlined_call_operand.hbm [shape: f32[16,32], index: 0, kind: input, shape index: {}]   ;;  %s4767_s1 = inlined_call_operand.vmem [shape: f32[2,8], index: 1, kind: input, shape index: {}]   ;;  %s4768_s2 = inlined_call_operand.hbm [shape: f32[16,32], index: 2, kind: input, shape index: {}]   ;;  %s4769_s3 = inlined_call_operand.vmem [shape: f32[2,8], index: 3, kind: input, shape index: {}]   ;;  %s4770_s4 = inlined_call_operand.hbm [shape: f32[272,128], index: 4, kind: input, shape index: {}]   ;;  %s4771_s5 = inlined_call_operand.hbm [shape: f32[16,32], index: 5, kind: output, shape index: {}]  }
   0x1   :  { %11 = vsyncpa [#allocation6], 0 }
   0x2   :  { %12 = vsyncpa [#allocation4], 0  ;;  %s4269_s18 = smov [#allocation5]   ;;  %s4270_s20 = smov [#allocation2]  }
   0x3   :  { %s32_s19 = sshll.u32 %s4269_s18, 4  ;;  %s18_s21 = sshll.u32 %s4270_s20, 4  ;;  %s33_s19 = int_to_ptr.vmem [resolvable:$true] %s32_s19  ;;  %s4320_s21 = int_to_ptr.vmem [resolvable:$true] %s18_s21 }
   0x4   :  { %s4175_s24 = scalar_lea.hbm %s4768_s2, 256 }
   0x5   :  { %p4176_p0 = scmp.ne.s32.totalorder %s4768_s2, %s4175_s24  ;;  %p4179_p1 = scmp.lt.u32.totalorder %s4175_s24, %s4768_s2 }
   0x7   :  { %p4181_p2 = pnand %p4179_p1, %p4176_p0 }
   0x9   :  { %4184 = shalt.err (!%p4181_p2)
}
   0xa   :  { %s4185_s29 = scalar_lea.vmem %s33_s19, 256  ;;  %p4190_p4 = scmp.lt.s32.totalorder %s33_s19, %s33_s19 }
   0xb   :  { %p4186_p3 = scmp.ne.s32.totalorder %s33_s19, %s4185_s29  ;;  %p4191_p5 = scmp.lt.s32.totalorder %s4185_s29, %s4185_s29 }
   0xd   :  { %p4192_p6 = por %p4191_p5, %p4190_p4 }
   0xf   :  { %p4193_p7 = pnand %p4192_p6, %p4186_p3 }
  0x11   :  { %4196 = shalt.err (!%p4193_p7)
}
  0x12   :  { %s4271_s30 = smov 128   ;;  %s4272_s6 = smov 8  }
  0x13   :  { %38 = dma.hbm_to_vmem [thread:$0]  %s4768_s2, 256, %s33_s19, [#allocation6], %s4271_s30, %s4271_s30, %s4272_s6  }
  0x14   :  { %s4197_s11 = scalar_lea.hbm %s4766_s0, 256 }
  0x15   :  { %p4198_p8 = scmp.ne.s32.totalorder %s4766_s0, %s4197_s11  ;;  %p4201_p9 = scmp.lt.u32.totalorder %s4197_s11, %s4766_s0 }
  0x17   :  { %p4203_p10 = pnand %p4201_p9, %p4198_p8 }
  0x19   :  { %4206 = shalt.err (!%p4203_p10)
}
  0x1a   :  { %s4207_s16 = scalar_lea.vmem %s4320_s21, 256  ;;  %p4212_p12 = scmp.lt.s32.totalorder %s4320_s21, %s4320_s21 }
  0x1b   :  { %p4208_p11 = scmp.ne.s32.totalorder %s4320_s21, %s4207_s16  ;;  %p4213_p13 = scmp.lt.s32.totalorder %s4207_s16, %s4207_s16 }
  0x1d   :  { %p4214_p0 = por %p4213_p13, %p4212_p12 }
  0x1f   :  { %p4215_p1 = pnand %p4214_p0, %p4208_p11 }
  0x21   :  { %4218 = shalt.err (!%p4215_p1)
}
  0x22   :  { %24 = dma.hbm_to_vmem [thread:$0]  %s4766_s0, 256, %s4320_s21, [#allocation3], %s4271_s30, %s4271_s30, %s4272_s6  }
  0x23   :  { %s4273_s18 = smov [#allocation7]   ;;  %s4219_s23 = scalar_lea.hbm %s4770_s4, 4352 }
  0x24   :  { %s46_s19 = sshll.u32 %s4273_s18, 4  ;;  %p4220_p2 = scmp.ne.s32.totalorder %s4770_s4, %s4219_s23  ;;  %s47_s19 = int_to_ptr.vmem [resolvable:$true] %s46_s19 }
  0x25   :  { %p4223_p3 = scmp.lt.u32.totalorder %s4219_s23, %s4770_s4 }
  0x27   :  { %p4225_p4 = pnand %p4223_p3, %p4220_p2 }
  0x29   :  { %4228 = shalt.err (!%p4225_p4)
}
  0x2a   :  { %s4229_s28 = scalar_lea.vmem %s47_s19, 4352  ;;  %p4234_p6 = scmp.lt.s32.totalorder %s47_s19, %s47_s19 }
  0x2b   :  { %p4230_p5 = scmp.ne.s32.totalorder %s47_s19, %s4229_s28  ;;  %p4235_p7 = scmp.lt.s32.totalorder %s4229_s28, %s4229_s28 }
  0x2d   :  { %p4236_p8 = por %p4235_p7, %p4234_p6 }
  0x2f   :  { %p4237_p9 = pnand %p4236_p8, %p4230_p5 }
  0x31   :  { %4240 = shalt.err (!%p4237_p9)
}
  0x32   :  { %52 = dma.hbm_to_vmem [thread:$0]  %s4770_s4, 4352, %s47_s19, [#allocation6], %s4271_s30, %s4271_s30, %s4272_s6  }
  0x33   :  { %4263 = dma.done.wait [#allocation3], 256  }
  0x34   :  { %4264 = vsyncadd [#allocation3], 4294967040 }
  0x35   :  { %4265 = dma.done.wait [#allocation6], 4608  }
  0x36   :  { %4266 = vsyncadd [#allocation6], 4294962688  ;;  %vm73_vm0 = vcmask 261120   ;;  %v64_v0 = vld [vmem:[#allocation7] sm:$0xff]  ;;  %v65_v1 = vld [vmem:[#allocation7 + $0x8] sm:$0xff]  ;;  %v4274_v8 = vmov 0.0  }
  0x37   :  { %v66_v2 = vld [vmem:[#allocation7 + $0x10] sm:$0xff]  ;;  %v4010_v3 = vpack.c.bf16 %v65_v1, %v64_v0  ;;  %v67_v4 = vld [vmem:[#allocation7 + $0x18] sm:$0xff]  ;;  %v4372_v5 = vld [vmem:[#allocation2] sm:$0xff]  ;;  %3786 = vmatprep.subr.mxu0 %v4274_v8  ;;  %vm4275_vm1 = vmmov 0   ;;  %s4276_s4 = smov 120   ;;  %s4277_s29 = smov 96  }
  0x38   :  { %v4014_v6 = vpack.c.bf16 %v67_v4, %v66_v2  ;;  %3773 = vmatprep.mubr.msk.f32.mxu1 %vm73_vm0, %v4372_v5  ;;  %v4376_v7 = vld [vmem:[#allocation2 + $0x8] sm:$0xff]  ;;  %3788 = vmatprep.mubr.msk.f32.mxu0 %vm4275_vm1, %v4274_v8  ;;  %v3576_v9 = vld [vmem:[#allocation7 + $0x100] ss:$0 sm:$0xff]  ;;  %s4278_s7 = smov 80   ;;  %s4279_s8 = smov 88   ;;  %vm170_vm2 = vcmask 64512  }
  0x39   :  { %4011 = vmatprep.subr.bf16.mxu1 %v4010_v3  ;;  %s4280_s9 = smov 72   ;;  %s4281_s10 = smov 112   ;;  %v3579_v29 = vld [vmem:[%s4767_s1] ss:$0 sm:$0xff]  ;;  %v3592_v45 = vld [vmem:[%s4767_s1 + $0x1] ss:$0 sm:$0xff] }
  0x3a   :  { %4013 = vmatpush3.bf16.msra.mxu1 %v4010_v3  ;;  %s4282_s11 = smov 104   ;;  %s4283_s12 = smov 56   ;;  %vm840_vm3 = vcmask 130048   ;;  %vm842_vm4 = vcmask 195584   ;;  %vm3432_vm5 = vcmask 523264  }
  0x3b   :  { %4015 = vmatprep.subr.bf16.mxu1 %v4014_v6  ;;  %s4284_s13 = smov 64   ;;  %s4285_s1 = smov 40  }
  0x3c   :  { %s4286_s17 = smov 48   ;;  %s4287_s18 = smov 16  }
  0x3d   :  { %s4288_s19 = smov 24  }
  0x3e   :  { %4017 = vmatpush3.bf16.msra.mxu1 %v4014_v6 }
  0x3f   :  { %3776 = vmatprep.subr.mxu1 %v4274_v8 }
  0x41   :  { %3774 = vmatmul.mubr.msk.f32.vlgmr.msra.gmra.mrb[0].mxu1 %vm73_vm0, %v4376_v7 }
  0x42   :  { %3778 = vmatprep.mubr.msk.f32.mxu1 %vm4275_vm1, %v4274_v8 }
 0x114   :  { %v3775_v10 = vpop.f32.mrb[0].mxu1 }
 0x115   :  { %v146_v11 = vpop.f32.mrb[1].mxu1  ;;  %v4400_v13 = vadd.f32 %v3775_v10, %v3576_v9 }
 0x116   :  { %v4386_v12 = vadd.f32 %v3576_v9, %v146_v11 }
 0x118   :  { %332 = vrot.lane.b32.xlu1 %v4386_v12, %s4276_s4  ;;  %168 = vrot.lane.b32.xlu0 %v4386_v12, %s4277_s29 }
 0x11c   :  { %499 = vrot.lane.b32.xlu1 %v4386_v12, %s4278_s7  ;;  %334 = vrot.lane.b32.xlu0 %v4386_v12, %s4279_s8 }
 0x120   :  { %664 = vrot.lane.b32.xlu1 %v4386_v12, %s4280_s9  ;;  %497 = vrot.lane.b32.xlu0 %v4386_v12, %s4281_s10 }
 0x124   :  { %850 = vrot.lane.b32.xlu1 %v4400_v13, %s4277_s29  ;;  %662 = vrot.lane.b32.xlu0 %v4386_v12, %s4282_s11 }
 0x128   :  { %1013 = vrot.lane.b32.xlu1 %v4400_v13, %s4276_s4  ;;  %1015 = vrot.lane.b32.xlu0 %v4400_v13, %s4279_s8 }
 0x12c   :  { %1178 = vrot.lane.b32.xlu1 %v4400_v13, %s4281_s10  ;;  %1180 = vrot.lane.b32.xlu0 %v4400_v13, %s4278_s7 }
 0x130   :  { %1343 = vrot.lane.b32.xlu1 %v4400_v13, %s4282_s11  ;;  %1345 = vrot.lane.b32.xlu0 %v4400_v13, %s4280_s9 }
 0x134   :  { %421 = vrot.lane.b32.xlu1 %v4386_v12, %s4283_s12  ;;  %256 = vrot.lane.b32.xlu0 %v4386_v12, %s4284_s13 }
 0x18a   :  { %v333_v14 = vpop.permute.xlu1 %332  ;;  %v169_v15 = vpop.permute.xlu0 %168 }
 0x18b   :  { %3777 = vmatpush3.xpose.msk.msra.mxu1 %vm170_vm2, %v169_v15 }
 0x18c   :  { %3781 = vmatprep.subr.mxu1 %v4274_v8 }
 0x18e   :  { %v500_v16 = vpop.permute.xlu1 %499  ;;  %3779 = vmatmul.mubr.msk.f32.vlgmr.msra.gmra.mrb[2].mxu1 %vm170_vm2, %v4386_v12  ;;  %v335_v17 = vpop.permute.xlu0 %334 }
 0x18f   :  { %3787 = vmatpush3.xpose.msk.msra.mxu0 %vm170_vm2, %v335_v17  ;;  %3783 = vmatprep.mubr.msk.f32.mxu1 %vm4275_vm1, %v4274_v8 }
 0x190   :  { %3796 = vmatprep.subr.mxu0 %v4274_v8 }
 0x192   :  { %v665_v18 = vpop.permute.xlu1 %664  ;;  %3789 = vmatmul.mubr.msk.f32.vlgmr.msra.gmra.mrb[0].mxu0 %vm170_vm2, %v333_v14  ;;  %v498_v19 = vpop.permute.xlu0 %497 }
 0x193   :  { %3797 = vmatpush3.xpose.msk.msra.mxu0 %vm170_vm2, %v500_v16  ;;  %3798 = vmatprep.mubr.msk.f32.mxu0 %vm4275_vm1, %v4274_v8 }
 0x194   :  { %3806 = vmatprep.subr.mxu0 %v4274_v8 }
 0x196   :  { %3799 = vmatmul.mubr.msk.f32.vlgmr.msra.gmra.mrb[2].mxu0 %vm170_vm2, %v498_v19  ;;  %v663_v20 = vpop.permute.xlu0 %662  ;;  %v851_v21 = vpop.permute.xlu1 %850 }
 0x197   :  { %3807 = vmatpush3.xpose.msk.msra.mxu0 %vm170_vm2, %v665_v18  ;;  %3808 = vmatprep.mubr.msk.f32.mxu0 %vm4275_vm1, %v4274_v8 }
 0x198   :  { %3816 = vmatprep.subr.mxu0 %v4274_v8 }
 0x19a   :  { %3809 = vmatmul.mubr.msk.f32.vlgmr.msra.gmra.mrb[4].mxu0 %vm170_vm2, %v663_v20  ;;  %v1016_v22 = vpop.permute.xlu0 %1015  ;;  %v1014_v23 = vpop.permute.xlu1 %1013 }
 0x19b   :  { %3817 = vmatpush3.xpose.msk.msra.mxu0 %vm170_vm2, %v851_v21  ;;  %3818 = vmatprep.mubr.msk.f32.mxu0 %vm4275_vm1, %v4274_v8 }
 0x19c   :  { %3826 = vmatprep.subr.mxu0 %v4274_v8 }
 0x19e   :  { %3819 = vmatmul.mubr.msk.f32.vlgmr.msra.gmra.mrb[6].mxu0 %vm170_vm2, %v4400_v13  ;;  %v1181_v24 = vpop.permute.xlu0 %1180  ;;  %v1179_v26 = vpop.permute.xlu1 %1178 }
 0x19f   :  { %3827 = vmatpush3.xpose.msk.msra.mxu0 %vm170_vm2, %v1016_v22  ;;  %3828 = vmatprep.mubr.msk.f32.mxu0 %vm4275_vm1, %v4274_v8 }
 0x1a0   :  { %3836 = vmatprep.subr.mxu0 %v4274_v8 }
 0x1a2   :  { %3829 = vmatmul.mubr.msk.f32.vlgmr.msra.gmra.mrb[8].mxu0 %vm170_vm2, %v1014_v23  ;;  %v1346_v25 = vpop.permute.xlu0 %1345  ;;  %v1344_v28 = vpop.permute.xlu1 %1343 }
 0x1a3   :  { %3837 = vmatpush3.xpose.msk.msra.mxu0 %vm170_vm2, %v1181_v24  ;;  %3838 = vmatprep.mubr.msk.f32.mxu0 %vm4275_vm1, %v4274_v8 }
 0x1a4   :  { %3846 = vmatprep.subr.mxu0 %v4274_v8 }
 0x1a6   :  { %3839 = vmatmul.mubr.msk.f32.vlgmr.msra.gmra.mrb[10].mxu0 %vm170_vm2, %v1179_v26  ;;  %v257_v27 = vpop.permute.xlu0 %256  ;;  %v4480_v63 = vpop.permute.xlu1 %421 }
 0x1a7   :  { %3782 = vmatpush3.msra.mxu1 %v257_v27  ;;  %3847 = vmatpush3.xpose.msk.msra.mxu0 %vm170_vm2, %v1346_v25 }
 0x1a8   :  { %3848 = vmatprep.mubr.msk.f32.mxu0 %vm4275_vm1, %v4274_v8  ;;  %3791 = vmatprep.subr.mxu1 %v4274_v8 }
 0x1aa   :  { %3849 = vmatmul.mubr.msk.f32.vlgmr.msra.gmra.mrb[12].mxu0 %vm170_vm2, %v1344_v28 }
 0x261   :  { %v241_v30 = vpop.f32.mrb[2].mxu1 }
 0x262   :  { %v242_v31 = vadd.f32 %v3579_v29, %v241_v30  ;;  %v3780_v32 = vpop.f32.mrb[3].mxu1 }
 0x264   :  { %v245_v33 = vsel %vm170_vm2, %v242_v31, -inf }
 0x265   :  { %246 = vmax.xlane.f32.xlu0 %v245_v33  ;;  %v406_v34 = vpop.f32.mrb[0].mxu0 }
 0x266   :  { %v407_v35 = vadd.f32 %v3579_v29, %v406_v34  ;;  %v3790_v36 = vpop.f32.mrb[1].mxu0 }
 0x268   :  { %v410_v37 = vsel %vm170_vm2, %v407_v35, -inf }
 0x269   :  { %411 = vmax.xlane.f32.xlu1 %v410_v37  ;;  %v571_v38 = vpop.f32.mrb[2].mxu0 }
 0x26a   :  { %v572_v39 = vadd.f32 %v3579_v29, %v571_v38  ;;  %v3800_v40 = vpop.f32.mrb[3].mxu0 }
 0x26c   :  { %v575_v41 = vsel %vm170_vm2, %v572_v39, -inf }
 0x26d   :  { %576 = vmax.xlane.f32.xlu0 %v575_v41  ;;  %v736_v42 = vpop.f32.mrb[4].mxu0 }
 0x26e   :  { %v737_v43 = vadd.f32 %v3579_v29, %v736_v42  ;;  %v3810_v44 = vpop.f32.mrb[5].mxu0 }
 0x270   :  { %v740_v46 = vsel %vm170_vm2, %v737_v43, -inf }
 0x271   :  { %741 = vmax.xlane.f32.xlu0 %v740_v46  ;;  %v922_v47 = vpop.f32.mrb[6].mxu0 }
 0x272   :  { %v923_v48 = vadd.f32 %v3592_v45, %v922_v47  ;;  %v3820_v49 = vpop.f32.mrb[7].mxu0 }
 0x274   :  { %v926_v50 = vsel %vm170_vm2, %v923_v48, -inf }
 0x275   :  { %927 = vmax.xlane.f32.xlu1 %v926_v50  ;;  %v1087_v51 = vpop.f32.mrb[8].mxu0 }
 0x276   :  { %v1088_v52 = vadd.f32 %v3592_v45, %v1087_v51  ;;  %v3830_v53 = vpop.f32.mrb[9].mxu0 }
 0x278   :  { %v1091_v54 = vsel %vm170_vm2, %v1088_v52, -inf }
 0x279   :  { %1092 = vmax.xlane.f32.xlu0 %v1091_v54  ;;  %v1252_v55 = vpop.f32.mrb[10].mxu0 }
 0x27a   :  { %v1253_v56 = vadd.f32 %v3592_v45, %v1252_v55  ;;  %v3840_v57 = vpop.f32.mrb[11].mxu0 }
 0x27c   :  { %v1256_v58 = vsel %vm170_vm2, %v1253_v56, -inf }
 0x27d   :  { %1257 = vmax.xlane.f32.xlu1 %v1256_v58  ;;  %v1417_v59 = vpop.f32.mrb[12].mxu0 }
 0x27e   :  { %v1418_v60 = vadd.f32 %v3592_v45, %v1417_v59  ;;  %v3850_v61 = vpop.f32.mrb[13].mxu0 }
 0x280   :  { %v1421_v62 = vsel %vm170_vm2, %v1418_v60, -inf }
 0x281   :  { %1422 = vmax.xlane.f32.xlu0 %v1421_v62 }
 0x28e   :  { %751 = vrot.lane.b32.xlu1 %v4386_v12, %s4285_s1 }
 0x297   :  { %586 = vrot.lane.b32.xlu0 %v4386_v12, %s4286_s17 }
 0x2f2   :  { %v247_v0 = vpop.xlane.xlu0 %246 }
 0x2f3   :  { %v248_v1 = vsub.f32 %v242_v31, %v247_v0 }
 0x2f5   :  { %v249_v2 = vmul.f32 1.442695, %v248_v1 }
 0x2f6   :  { %v412_v3 = vpop.xlane.xlu1 %411 }
 0x2f7   :  { %4095 = vpow2.f32 %v249_v2  ;;  %v413_v4 = vsub.f32 %v407_v35, %v412_v3 }
 0x2f9   :  { %v414_v6 = vmul.f32 1.442695, %v413_v4 }
 0x2fa   :  { %v577_v9 = vpop.xlane.xlu0 %576 }
 0x2fb   :  { %4097 = vpow2.f32 %v414_v6  ;;  %v578_v10 = vsub.f32 %v572_v39, %v577_v9 }
 0x2fd   :  { %v579_v11 = vmul.f32 1.442695, %v578_v10 }
 0x2fe   :  { %v742_v14 = vpop.xlane.xlu0 %741 }
 0x2ff   :  { %4099 = vpow2.f32 %v579_v11  ;;  %v743_v15 = vsub.f32 %v737_v43, %v742_v14 }
 0x301   :  { %v4096_v16 = vpop.eup %4095  ;;  %v744_v17 = vmul.f32 1.442695, %v743_v15 }
 0x302   :  { %v251_v12 = vsel %vm170_vm2, %v4096_v16, 0.0  ;;  %v928_v24 = vpop.xlane.xlu1 %927 }
 0x303   :  { %4101 = vpow2.f32 %v744_v17  ;;  %252 = vadd.xlane.f32.xlu1 %v251_v12  ;;  %v929_v25 = vsub.f32 %v923_v48, %v928_v24  ;;  %v157_v24 = vld [vmem:[#allocation7 + $0x30] sm:$0xff] }
 0x305   :  { %v4098_v18 = vpop.eup %4097  ;;  %v930_v29 = vmul.f32 1.442695, %v929_v25  ;;  %v158_v25 = vld [vmem:[#allocation7 + $0x38] sm:$0xff] }
 0x306   :  { %v416_v19 = vsel %vm170_vm2, %v4098_v18, 0.0  ;;  %v1093_v26 = vpop.xlane.xlu0 %1092 }
 0x307   :  { %417 = vadd.xlane.f32.xlu0 %v416_v19  ;;  %v1094_v28 = vsub.f32 %v1088_v52, %v1093_v26  ;;  %4103 = vpow2.f32 %v930_v29  ;;  %v4022_v26 = vpack.c.bf16 %v158_v25, %v157_v24  ;;  %v3608_v24 = vld [vmem:[#allocation7 + $0x102] ss:$0 sm:$0xff] }
 0x309   :  { %v4100_v20 = vpop.eup %4099  ;;  %v1095_v32 = vmul.f32 1.442695, %v1094_v28 }
 0x30a   :  { %v581_v21 = vsel %vm170_vm2, %v4100_v20, 0.0  ;;  %v1258_v27 = vpop.xlane.xlu1 %1257 }
 0x30b   :  { %582 = vadd.xlane.f32.xlu1 %v581_v21  ;;  %v1259_v30 = vsub.f32 %v1253_v56, %v1258_v27  ;;  %4105 = vpow2.f32 %v1095_v32  ;;  %v155_v21 = vld [vmem:[#allocation7 + $0x20] sm:$0xff] }
 0x30d   :  { %v4485_v22 = vpop.eup %4101  ;;  %v1260_v33 = vmul.f32 1.442695, %v1259_v30 }
 0x30e   :  { %v746_v23 = vsel %vm170_vm2, %v4485_v22, 0.0  ;;  %v1423_v31 = vpop.xlane.xlu0 %1422  ;;  %v752_v44 = vpop.permute.xlu1 %751 }
 0x30f   :  { %747 = vadd.xlane.f32.xlu0 %v746_v23  ;;  %v1424_v34 = vsub.f32 %v1418_v60, %v1423_v31  ;;  %4107 = vpow2.f32 %v1260_v33 }
 0x311   :  { %v1425_v35 = vmul.f32 1.442695, %v1424_v34  ;;  %v4104_v36 = vpop.eup %4103 }
 0x312   :  { %v932_v38 = vsel %vm170_vm2, %v4104_v36, 0.0  ;;  %v587_v45 = vpop.permute.xlu0 %586 }
 0x313   :  { %4109 = vpow2.f32 %v1425_v35 }
 0x315   :  { %v4493_v37 = vpop.eup %4105 }
 0x316   :  { %v1097_v41 = vsel %vm170_vm2, %v4493_v37, 0.0 }
 0x319   :  { %v4496_v39 = vpop.eup %4107 }
 0x31a   :  { %v1262_v40 = vsel %vm170_vm2, %v4496_v39, 0.0 }
 0x31c   :  { %1102 = vrot.lane.b32.xlu1 %v4400_v13, %s4283_s12 }
 0x31d   :  { %v4502_v42 = vpop.eup %4109 }
 0x31e   :  { %v1427_v43 = vsel %vm170_vm2, %v4502_v42, 0.0 }
 0x325   :  { %937 = vrot.lane.b32.xlu0 %v4400_v13, %s4284_s13 }
 0x340   :  { %933 = vadd.xlane.f32.xlu1 %v932_v38 }
 0x344   :  { %1263 = vadd.xlane.f32.xlu1 %v1262_v40  ;;  %1098 = vadd.xlane.f32.xlu0 %v1097_v41 }
 0x348   :  { %1428 = vadd.xlane.f32.xlu1 %v1427_v43 }
 0x359   :  { %1432 = vrot.lane.b32.xlu1 %v4400_v13, %s4285_s1 }
 0x35a   :  { %1267 = vrot.lane.b32.xlu0 %v4400_v13, %s4286_s17 }
 0x390   :  { %v253_v46 = vpop.xlane.xlu1 %252 }
 0x391   :  { %4111 = vrcp.f32 %v253_v46 }
 0x394   :  { %v418_v47 = vpop.xlane.xlu0 %417 }
 0x395   :  { %4113 = vrcp.f32 %v418_v47  ;;  %v3605_v47 = vld [vmem:[#allocation7 + $0x101] ss:$0 sm:$0xff] }
 0x398   :  { %v583_v48 = vpop.xlane.xlu1 %582 }
 0x399   :  { %4115 = vrcp.f32 %v583_v48 }
 0x39b   :  { %v4112_v49 = vpop.eup %4111 }
 0x39c   :  { %v255_v50 = vmul.f32 %v4112_v49, %v4096_v16  ;;  %v748_v51 = vpop.xlane.xlu0 %747  ;;  %v1103_v58 = vpop.permute.xlu1 %1102 }
 0x39d   :  { %4117 = vrcp.f32 %v748_v51 }
 0x39e   :  { %3784 = vmatmul.mubr.msk.f32.vlgmr.msra.gmra.mrb[4].mxu1 %vm170_vm2, %v255_v50 }
 0x39f   :  { %v4114_v52 = vpop.eup %4113  ;;  %3792 = vmatpush3.msra.mxu1 %v4480_v63  ;;  %3793 = vmatprep.mubr.msk.f32.mxu1 %vm4275_vm1, %v4274_v8 }
 0x3a0   :  { %v420_v13 = vmul.f32 %v4114_v52, %v4098_v18  ;;  %3801 = vmatprep.subr.mxu1 %v4274_v8  ;;  %v938_v57 = vpop.permute.xlu0 %937 }
 0x3a2   :  { %3794 = vmatmul.mubr.msk.f32.vlgmr.msra.gmra.mrb[6].mxu1 %vm170_vm2, %v420_v13 }
 0x3a3   :  { %v4116_v53 = vpop.eup %4115  ;;  %3802 = vmatpush3.msra.mxu1 %v587_v45  ;;  %3803 = vmatprep.mubr.msk.f32.mxu1 %vm4275_vm1, %v4274_v8 }
 0x3a4   :  { %v585_v54 = vmul.f32 %v4116_v53, %v4100_v20  ;;  %3811 = vmatprep.subr.mxu1 %v4274_v8 }
 0x3a6   :  { %3804 = vmatmul.mubr.msk.f32.vlgmr.msra.gmra.mrb[8].mxu1 %vm170_vm2, %v585_v54 }
 0x3a7   :  { %v4118_v55 = vpop.eup %4117  ;;  %3812 = vmatpush3.msra.mxu1 %v752_v44  ;;  %3813 = vmatprep.mubr.msk.f32.mxu1 %vm4275_vm1, %v4274_v8 }
 0x3a8   :  { %v750_v56 = vmul.f32 %v4118_v55, %v4485_v22  ;;  %3821 = vmatprep.subr.mxu1 %v4274_v8  ;;  %v156_v22 = vld [vmem:[#allocation7 + $0x28] sm:$0xff] }
 0x3a9   :  { %v4018_v23 = vpack.c.bf16 %v156_v22, %v155_v21 }
 0x3aa   :  { %3814 = vmatmul.mubr.msk.f32.vlgmr.msra.gmra.mrb[10].mxu1 %vm170_vm2, %v750_v56 }
 0x3ab   :  { %3822 = vmatpush3.msra.mxu1 %v938_v57  ;;  %3823 = vmatprep.mubr.msk.f32.mxu1 %vm4275_vm1, %v4274_v8 }
 0x3ac   :  { %3831 = vmatprep.subr.mxu1 %v4274_v8  ;;  %4019 = vmatprep.subr.bf16.mxu0 %v4018_v23 }
 0x3ad   :  { %4021 = vmatpush3.bf16.msra.mxu0 %v4018_v23 }
 0x3ae   :  { %4023 = vmatprep.subr.bf16.mxu0 %v4022_v26 }
 0x3b1   :  { %4025 = vmatpush3.bf16.msra.mxu0 %v4022_v26  ;;  %v3609_v26 = vld [vmem:[#allocation7 + $0x103] ss:$0 sm:$0xff] }
 0x3cd   :  { %v934_v59 = vpop.xlane.xlu1 %933 }
 0x3ce   :  { %4119 = vrcp.f32 %v934_v59 }
 0x3d1   :  { %v1264_v60 = vpop.xlane.xlu1 %1263  ;;  %v1099_v61 = vpop.xlane.xlu0 %1098 }
 0x3d2   :  { %4121 = vrcp.f32 %v1099_v61 }
 0x3d3   :  { %4123 = vrcp.f32 %v1264_v60 }
 0x3d5   :  { %v1429_v62 = vpop.xlane.xlu1 %1428  ;;  %v1268_v4 = vpop.permute.xlu0 %1267 }
 0x3d6   :  { %4125 = vrcp.f32 %v1429_v62 }
 0x3d8   :  { %v4120_v63 = vpop.eup %4119 }
 0x3d9   :  { %v936_v0 = vmul.f32 %v4120_v63, %v4104_v36  ;;  %v1433_v10 = vpop.permute.xlu1 %1432 }
 0x3db   :  { %3824 = vmatmul.mubr.msk.f32.vlgmr.msra.gmra.mrb[12].mxu1 %vm170_vm2, %v936_v0  ;;  %v1742_v0 = vld [vmem:[#allocation7 + $0x68] sm:$0xff] }
 0x3dc   :  { %3832 = vmatpush3.msra.mxu1 %v1103_v58  ;;  %3833 = vmatprep.mubr.msk.f32.mxu1 %vm4275_vm1, %v4274_v8  ;;  %v4122_v1 = vpop.eup %4121 }
 0x3dd   :  { %3841 = vmatprep.subr.mxu1 %v4274_v8  ;;  %v1101_v2 = vmul.f32 %v4122_v1, %v4493_v37  ;;  %v4124_v3 = vpop.eup %4123 }
 0x3de   :  { %v1266_v6 = vmul.f32 %v4124_v3, %v4496_v39  ;;  %v1744_v3 = vld [vmem:[#allocation7 + $0x78] sm:$0xff] }
 0x3df   :  { %3834 = vmatmul.mubr.msk.f32.vlgmr.msra.gmra.mrb[14].mxu1 %vm170_vm2, %v1101_v2  ;;  %v1743_v2 = vld [vmem:[#allocation7 + $0x70] sm:$0xff] }
 0x3e0   :  { %3842 = vmatpush3.msra.mxu1 %v1268_v4  ;;  %3843 = vmatprep.mubr.msk.f32.mxu1 %vm4275_vm1, %v4274_v8  ;;  %v4126_v9 = vpop.eup %4125  ;;  %v4038_v4 = vpack.c.bf16 %v1744_v3, %v1743_v2 }
 0x3e1   :  { %3851 = vmatprep.subr.mxu1 %v4274_v8  ;;  %v1431_v11 = vmul.f32 %v4126_v9, %v4502_v42  ;;  %v1649_v9 = vld [vmem:[#allocation7 + $0x40] sm:$0xff] }
 0x3e3   :  { %3844 = vmatmul.mubr.msk.f32.vlgmr.msra.gmra.mrb[16].mxu1 %vm170_vm2, %v1266_v6  ;;  %v1739_v6 = vld [vmem:[#allocation5] sm:$0xff] }
 0x3e4   :  { %3852 = vmatpush3.msra.mxu1 %v1433_v10  ;;  %3853 = vmatprep.mubr.msk.f32.mxu1 %vm4275_vm1, %v4274_v8  ;;  %v1650_v10 = vld [vmem:[#allocation7 + $0x48] sm:$0xff] }
 0x3e7   :  { %3854 = vmatmul.mubr.msk.f32.vlgmr.msra.gmra.mrb[18].mxu1 %vm170_vm2, %v1431_v11  ;;  %v4026_v11 = vpack.c.bf16 %v1650_v10, %v1649_v9 }
 0x3e9   :  { %4027 = vmatprep.subr.bf16.mxu1 %v4026_v11 }
 0x3ea   :  { %4029 = vmatpush3.bf16.msra.mxu1 %v4026_v11 }
 0x471   :  { %v328_v14 = vpop.f32.mrb[4].mxu1 }
 0x472   :  { %v3785_v15 = vpop.f32.mrb[5].mxu1 }
 0x473   :  { %v1651_v15 = vld [vmem:[#allocation7 + $0x50] sm:$0xff] }
 0x475   :  { %v493_v16 = vpop.f32.mrb[6].mxu1 }
 0x476   :  { %828 = vrot.lane.b32.xlu0 %v493_v16, %s4272_s6  ;;  %v3795_v17 = vpop.f32.mrb[7].mxu1  ;;  %v1652_v16 = vld [vmem:[#allocation7 + $0x58] sm:$0xff] }
 0x477   :  { %v4030_v17 = vpack.c.bf16 %v1652_v16, %v1651_v15 }
 0x479   :  { %v658_v12 = vpop.f32.mrb[8].mxu1  ;;  %4031 = vmatprep.subr.bf16.mxu1 %v4030_v17 }
 0x47a   :  { %832 = vrot.lane.b32.xlu1 %v658_v12, %s4287_s18  ;;  %v3805_v18 = vpop.f32.mrb[9].mxu1  ;;  %4033 = vmatpush3.bf16.msra.mxu1 %v4030_v17 }
 0x47b   :  { %3889 = vmatprep.subr.mxu1 %v4274_v8 }
 0x47d   :  { %v823_v19 = vpop.f32.mrb[10].mxu1 }
 0x47e   :  { %836 = vrot.lane.b32.xlu1 %v823_v19, %s4288_s19  ;;  %v3815_v20 = vpop.f32.mrb[11].mxu1 }
 0x4ae   :  { %v1009_v27 = vpop.f32.mrb[12].mxu1 }
 0x4af   :  { %v3825_v28 = vpop.f32.mrb[13].mxu1 }
 0x4b2   :  { %v1174_v29 = vpop.f32.mrb[14].mxu1 }
 0x4b3   :  { %1509 = vrot.lane.b32.xlu0 %v1174_v29, %s4272_s6  ;;  %v3835_v30 = vpop.f32.mrb[15].mxu1 }
 0x4b6   :  { %v1339_v31 = vpop.f32.mrb[16].mxu1 }
 0x4b7   :  { %1513 = vrot.lane.b32.xlu0 %v1339_v31, %s4287_s18  ;;  %v3845_v32 = vpop.f32.mrb[17].mxu1 }
 0x4ba   :  { %v1504_v33 = vpop.f32.mrb[18].mxu1 }
 0x4bb   :  { %1517 = vrot.lane.b32.xlu1 %v1504_v33, %s4288_s19  ;;  %v3855_v34 = vpop.f32.mrb[19].mxu1  ;;  %v3613_v33 = vld [vmem:[#allocation7 + $0x105] ss:$0 sm:$0xff] }
 0x4e8   :  { %v829_v35 = vpop.permute.xlu0 %828 }
 0x4e9   :  { %v839_v37 = vsel %vm170_vm2, %v328_v14, %v829_v35  ;;  %v1740_v14 = vld [vmem:[#allocation5 + $0x8] sm:$0xff] }
 0x4ec   :  { %v833_v36 = vpop.permute.xlu1 %832 }
 0x4ed   :  { %v841_v38 = vsel %vm840_vm3, %v839_v37, %v833_v36 }
 0x4f0   :  { %v837_v39 = vpop.permute.xlu1 %836 }
 0x4f1   :  { %v843_v40 = vsel %vm842_vm4, %v841_v38, %v837_v39  ;;  %v3610_v39 = vld [vmem:[#allocation7 + $0x104] ss:$0 sm:$0xff] }
 0x4f2   :  { %3864 = vmatprep.mubr.msk.f32.mxu0 %vm73_vm0, %v843_v40 }
 0x525   :  { %v1510_v41 = vpop.permute.xlu0 %1509 }
 0x526   :  { %v1520_v43 = vsel %vm170_vm2, %v1009_v27, %v1510_v41 }
 0x529   :  { %v1514_v42 = vpop.permute.xlu0 %1513 }
 0x52a   :  { %v1521_v44 = vsel %vm840_vm3, %v1520_v43, %v1514_v42 }
 0x52d   :  { %v1518_v45 = vpop.permute.xlu1 %1517 }
 0x52e   :  { %v1522_v46 = vsel %vm842_vm4, %v1521_v44, %v1518_v45 }
 0x52f   :  { %3865 = vmatmul.mubr.msk.f32.vlgmr.msra.gmra.mrb[14].mxu0 %vm73_vm0, %v1522_v46 }
 0x530   :  { %3886 = vmatprep.mubr.msk.f32.mxu0 %vm73_vm0, %v1739_v6  ;;  %v3629_v6 = vld [vmem:[%s4769_s3 + $0x1] ss:$0 sm:$0xff] }
 0x602   :  { %v3866_v48 = vpop.f32.mrb[14].mxu0 }
 0x603   :  { %v1605_v49 = vadd.f32 %v3866_v48, %v3605_v47  ;;  %v1599_v50 = vpop.f32.mrb[15].mxu0 }
 0x604   :  { %v1600_v51 = vadd.f32 %v3605_v47, %v1599_v50 }
 0x605   :  { %v1609_v52 = vadd.f32 %v1605_v49, %v4376_v7 }
 0x606   :  { %v1608_v13 = vadd.f32 %v1600_v51, %v4372_v5  ;;  %v1741_v5 = vld [vmem:[#allocation7 + $0x60] sm:$0xff] }
 0x607   :  { %v1613_v53 = vsel %vm73_vm0, %v1609_v52, 0.0  ;;  %v4034_v1 = vpack.c.bf16 %v1742_v0, %v1741_v5 }
 0x608   :  { %1614 = vadd.xlane.f32.xlu1 %v1613_v53  ;;  %v1610_v54 = vsel %vm73_vm0, %v1608_v13, 0.0 }
 0x609   :  { %1611 = vadd.xlane.f32.xlu0 %v1610_v54  ;;  %4035 = vmatprep.subr.bf16.mxu0 %v4034_v1 }
 0x60a   :  { %4037 = vmatpush3.bf16.msra.mxu0 %v4034_v1 }
 0x60b   :  { %4039 = vmatprep.subr.bf16.mxu0 %v4038_v4 }
 0x60e   :  { %4041 = vmatpush3.bf16.msra.mxu0 %v4038_v4 }
 0x60f   :  { %3899 = vmatprep.subr.mxu0 %v4274_v8 }
 0x611   :  { %3887 = vmatmul.mubr.msk.f32.vlgmr.msra.gmra.mrb[16].mxu0 %vm73_vm0, %v1740_v14 }
 0x612   :  { %3901 = vmatprep.mubr.msk.f32.mxu0 %vm4275_vm1, %v4274_v8 }
 0x695   :  { %v1615_v55 = vpop.xlane.xlu1 %1614 }
 0x696   :  { %v1618_v56 = vmul.f32 0.03125, %v1615_v55  ;;  %v1612_v57 = vpop.xlane.xlu0 %1611  ;;  %v3616_v55 = vld [vmem:[%s4769_s3] ss:$0 sm:$0xff]  ;;  %s4289_s3 = smov [#allocation8]  }
 0x697   :  { %v1617_v58 = vmul.f32 0.03125, %v1612_v57  ;;  %s3563_s25 = sshll.u32 %s4289_s3, 4  ;;  %s3564_s25 = int_to_ptr.vmem [resolvable:$true] %s3563_s25 }
 0x698   :  { %v1620_v59 = vsub.f32 %v1609_v52, %v1618_v56  ;;  %s4241_s26 = scalar_lea.vmem %s3564_s25, 256  ;;  %p4246_p11 = scmp.lt.s32.totalorder %s3564_s25, %s3564_s25 }
 0x699   :  { %v1619_v60 = vsub.f32 %v1608_v13, %v1617_v58  ;;  %p4242_p10 = scmp.ne.s32.totalorder %s3564_s25, %s4241_s26  ;;  %p4247_p12 = scmp.lt.s32.totalorder %s4241_s26, %s4241_s26 }
 0x69a   :  { %v1622_v63 = vmul.f32 %v1620_v59, %v1620_v59 }
 0x69b   :  { %v1621_v61 = vmul.f32 %v1619_v60, %v1619_v60  ;;  %p4248_p13 = por %p4247_p12, %p4246_p11 }
 0x69c   :  { %v1626_v7 = vsel %vm73_vm0, %v1622_v63, 0.0 }
 0x69d   :  { %v1623_v62 = vsel %vm73_vm0, %v1621_v61, 0.0  ;;  %p4249_p0 = pnand %p4248_p13, %p4242_p10 }
 0x69e   :  { %1624 = vadd.xlane.f32.xlu0 %v1623_v62 }
 0x6a2   :  { %1627 = vadd.xlane.f32.xlu0 %v1626_v7 }
 0x6e4   :  { %v3888_v34 = vpop.f32.mrb[16].mxu0 }
 0x6e5   :  { %v4579_v35 = vadd.f32 %v3888_v34, %v3613_v33  ;;  %v1822_v36 = vpop.f32.mrb[17].mxu0 }
 0x6e6   :  { %v4581_v37 = vadd.f32 %v3613_v33, %v1822_v36 }
 0x6e8   :  { %2008 = vrot.lane.b32.xlu1 %v4581_v37, %s4276_s4 }
 0x6ec   :  { %2173 = vrot.lane.b32.xlu1 %v4581_v37, %s4281_s10 }
 0x72b   :  { %v1625_v12 = vpop.xlane.xlu0 %1624 }
 0x72c   :  { %v1629_v18 = vmul.f32 0.03125, %v1625_v12 }
 0x72e   :  { %v1631_v19 = vadd.f32 1e-12, %v1629_v18 }
 0x72f   :  { %v1628_v20 = vpop.xlane.xlu0 %1627 }
 0x730   :  { %4127 = vrsqrt.f32 %v1631_v19  ;;  %v1630_v21 = vmul.f32 0.03125, %v1628_v20 }
 0x732   :  { %v1632_v22 = vadd.f32 1e-12, %v1630_v21 }
 0x734   :  { %4129 = vrsqrt.f32 %v1632_v22 }
 0x73a   :  { %v4128_v23 = vpop.eup %4127 }
 0x73b   :  { %v1635_v25 = vmul.f32 %v4128_v23, %v1619_v60 }
 0x73d   :  { %v1641_v27 = vmul.f32 %v3608_v24, %v1635_v25 }
 0x73e   :  { %v4130_v28 = vpop.eup %4129 }
 0x73f   :  { %v1636_v29 = vmul.f32 %v4130_v28, %v1620_v59  ;;  %v4569_v30 = vadd.f32 %v3609_v26, %v1641_v27 }
 0x741   :  { %v1642_v31 = vmul.f32 %v3608_v24, %v1636_v29  ;;  %3875 = vmatprep.mubr.msk.f32.mxu1 %vm73_vm0, %v4569_v30 }
 0x743   :  { %v4573_v32 = vadd.f32 %v3609_v26, %v1642_v31 }
 0x745   :  { %3876 = vmatmul.mubr.msk.f32.vlgmr.msra.gmra.mrb[20].mxu1 %vm73_vm0, %v4573_v32 }
 0x746   :  { %3891 = vmatprep.mubr.msk.f32.mxu1 %vm4275_vm1, %v4274_v8  ;;  %3890 = vmatpush3.xpose.msk.msra.mxu1 %vm170_vm2, %v4581_v37 }
 0x747   :  { %3894 = vmatprep.subr.mxu1 %v4274_v8 }
 0x75a   :  { %v2009_v38 = vpop.permute.xlu1 %2008 }
 0x75b   :  { %3900 = vmatpush3.xpose.msk.msra.mxu0 %vm170_vm2, %v2009_v38 }
 0x75c   :  { %3909 = vmatprep.subr.mxu0 %v4274_v8 }
 0x75e   :  { %v2174_v44 = vpop.permute.xlu1 %2173 }
 0x818   :  { %v3877_v40 = vpop.f32.mrb[20].mxu1 }
 0x819   :  { %v1730_v41 = vpop.f32.mrb[21].mxu1  ;;  %v1736_v43 = vadd.f32 %v3877_v40, %v3610_v39 }
 0x81a   :  { %v1731_v42 = vadd.f32 %v3610_v39, %v1730_v41 }
 0x81c   :  { %2171 = vrot.lane.b32.xlu1 %v1731_v42, %s4281_s10  ;;  %2006 = vrot.lane.b32.xlu0 %v1731_v42, %s4276_s4 }
 0x81d   :  { %3892 = vmatmul.mubr.msk.f32.vlgmr.msra.gmra.mrb[22].mxu1 %vm170_vm2, %v1731_v42 }
 0x81e   :  { %3896 = vmatprep.mubr.msk.f32.mxu1 %vm4275_vm1, %v4274_v8 }
 0x820   :  { %2336 = vrot.lane.b32.xlu1 %v1731_v42, %s4282_s11  ;;  %2338 = vrot.lane.b32.xlu0 %v4581_v37, %s4282_s11 }
 0x824   :  { %2684 = vrot.lane.b32.xlu1 %v1736_v43, %s4276_s4  ;;  %2686 = vrot.lane.b32.xlu0 %v4579_v35, %s4276_s4 }
 0x828   :  { %2849 = vrot.lane.b32.xlu1 %v1736_v43, %s4281_s10  ;;  %2851 = vrot.lane.b32.xlu0 %v4579_v35, %s4281_s10 }
 0x82c   :  { %3014 = vrot.lane.b32.xlu1 %v1736_v43, %s4282_s11  ;;  %3016 = vrot.lane.b32.xlu0 %v4579_v35, %s4282_s11 }
 0x830   :  { %2095 = vrot.lane.b32.xlu1 %v4581_v37, %s4279_s8  ;;  %1930 = vrot.lane.b32.xlu0 %v4581_v37, %s4277_s29 }
 0x88e   :  { %v2172_v45 = vpop.permute.xlu1 %2171  ;;  %v2007_v46 = vpop.permute.xlu0 %2006 }
 0x88f   :  { %3902 = vmatmul.mubr.msk.f32.vlgmr.msra.gmra.mrb[18].mxu0 %vm170_vm2, %v2007_v46 }
 0x890   :  { %3910 = vmatpush3.xpose.msk.msra.mxu0 %vm170_vm2, %v2174_v44  ;;  %3911 = vmatprep.mubr.msk.f32.mxu0 %vm4275_vm1, %v4274_v8 }
 0x891   :  { %3919 = vmatprep.subr.mxu0 %v4274_v8 }
 0x892   :  { %v2339_v47 = vpop.permute.xlu0 %2338  ;;  %v2337_v48 = vpop.permute.xlu1 %2336 }
 0x893   :  { %3912 = vmatmul.mubr.msk.f32.vlgmr.msra.gmra.mrb[20].mxu0 %vm170_vm2, %v2172_v45 }
 0x894   :  { %3920 = vmatpush3.xpose.msk.msra.mxu0 %vm170_vm2, %v2339_v47  ;;  %3921 = vmatprep.mubr.msk.f32.mxu0 %vm4275_vm1, %v4274_v8 }
 0x895   :  { %3929 = vmatprep.subr.mxu0 %v4274_v8 }
 0x896   :  { %v2687_v49 = vpop.permute.xlu0 %2686  ;;  %v2685_v50 = vpop.permute.xlu1 %2684 }
 0x897   :  { %3922 = vmatmul.mubr.msk.f32.vlgmr.msra.gmra.mrb[22].mxu0 %vm170_vm2, %v2337_v48 }
 0x898   :  { %3930 = vmatpush3.xpose.msk.msra.mxu0 %vm170_vm2, %v4579_v35  ;;  %3931 = vmatprep.mubr.msk.f32.mxu0 %vm4275_vm1, %v4274_v8 }
 0x899   :  { %3939 = vmatprep.subr.mxu0 %v4274_v8 }
 0x89a   :  { %v2852_v51 = vpop.permute.xlu0 %2851  ;;  %v2850_v13 = vpop.permute.xlu1 %2849 }
 0x89b   :  { %3932 = vmatmul.mubr.msk.f32.vlgmr.msra.gmra.mrb[24].mxu0 %vm170_vm2, %v1736_v43 }
 0x89c   :  { %3940 = vmatpush3.xpose.msk.msra.mxu0 %vm170_vm2, %v2687_v49  ;;  %3941 = vmatprep.mubr.msk.f32.mxu0 %vm4275_vm1, %v4274_v8 }
 0x89d   :  { %3949 = vmatprep.subr.mxu0 %v4274_v8 }
 0x89e   :  { %v3017_v52 = vpop.permute.xlu0 %3016  ;;  %v3015_v54 = vpop.permute.xlu1 %3014 }
 0x89f   :  { %3942 = vmatmul.mubr.msk.f32.vlgmr.msra.gmra.mrb[26].mxu0 %vm170_vm2, %v2685_v50 }
 0x8a0   :  { %3950 = vmatpush3.xpose.msk.msra.mxu0 %vm170_vm2, %v2852_v51  ;;  %3951 = vmatprep.mubr.msk.f32.mxu0 %vm4275_vm1, %v4274_v8 }
 0x8a1   :  { %3959 = vmatprep.subr.mxu0 %v4274_v8 }
 0x8a2   :  { %v1931_v53 = vpop.permute.xlu0 %1930  ;;  %v2096_v34 = vpop.permute.xlu1 %2095 }
 0x8a3   :  { %3895 = vmatpush3.msra.mxu1 %v1931_v53  ;;  %3952 = vmatmul.mubr.msk.f32.vlgmr.msra.gmra.mrb[28].mxu0 %vm170_vm2, %v2850_v13 }
 0x8a4   :  { %3960 = vmatpush3.xpose.msk.msra.mxu0 %vm170_vm2, %v3017_v52  ;;  %3961 = vmatprep.mubr.msk.f32.mxu0 %vm4275_vm1, %v4274_v8 }
 0x8a5   :  { %3904 = vmatprep.subr.mxu1 %v4274_v8 }
 0x8a7   :  { %3962 = vmatmul.mubr.msk.f32.vlgmr.msra.gmra.mrb[30].mxu0 %vm170_vm2, %v3015_v54 }
 0x8f0   :  { %v1915_v56 = vpop.f32.mrb[22].mxu1 }
 0x8f1   :  { %v1916_v57 = vadd.f32 %v3616_v55, %v1915_v56  ;;  %v3893_v58 = vpop.f32.mrb[23].mxu1 }
 0x8f3   :  { %v1919_v59 = vsel %vm170_vm2, %v1916_v57, -inf }
 0x8f4   :  { %1920 = vmax.xlane.f32.xlu0 %v1919_v59 }
 0x962   :  { %v2080_v60 = vpop.f32.mrb[18].mxu0 }
 0x963   :  { %v2081_v61 = vadd.f32 %v3616_v55, %v2080_v60  ;;  %v3903_v62 = vpop.f32.mrb[19].mxu0 }
 0x965   :  { %v2084_v63 = vsel %vm170_vm2, %v2081_v61, -inf }
 0x966   :  { %2085 = vmax.xlane.f32.xlu1 %v2084_v63  ;;  %v2245_v7 = vpop.f32.mrb[20].mxu0 }
 0x967   :  { %v2246_v5 = vadd.f32 %v3616_v55, %v2245_v7  ;;  %v3913_v0 = vpop.f32.mrb[21].mxu0 }
 0x969   :  { %v2249_v1 = vsel %vm170_vm2, %v2246_v5, -inf }
 0x96a   :  { %v2410_v2 = vpop.f32.mrb[22].mxu0  ;;  %2250 = vmax.xlane.f32.xlu0 %v2249_v1 }
 0x96b   :  { %v2411_v3 = vadd.f32 %v3616_v55, %v2410_v2  ;;  %v3923_v4 = vpop.f32.mrb[23].mxu0 }
 0x96d   :  { %v2414_v9 = vsel %vm170_vm2, %v2411_v3, -inf }
 0x96e   :  { %v2593_v10 = vpop.f32.mrb[24].mxu0  ;;  %2415 = vmax.xlane.f32.xlu0 %v2414_v9 }
 0x96f   :  { %v2594_v11 = vadd.f32 %v3629_v6, %v2593_v10  ;;  %v3933_v14 = vpop.f32.mrb[25].mxu0 }
 0x971   :  { %v2597_v15 = vsel %vm170_vm2, %v2594_v11, -inf }
 0x972   :  { %2598 = vmax.xlane.f32.xlu1 %v2597_v15  ;;  %v2758_v16 = vpop.f32.mrb[26].mxu0 }
 0x973   :  { %v2759_v17 = vadd.f32 %v3629_v6, %v2758_v16  ;;  %v3943_v12 = vpop.f32.mrb[27].mxu0 }
 0x975   :  { %v2762_v18 = vsel %vm170_vm2, %v2759_v17, -inf }
 0x976   :  { %v2923_v19 = vpop.f32.mrb[28].mxu0  ;;  %2763 = vmax.xlane.f32.xlu0 %v2762_v18 }
 0x977   :  { %v2924_v20 = vadd.f32 %v3629_v6, %v2923_v19  ;;  %v3953_v21 = vpop.f32.mrb[29].mxu0 }
 0x979   :  { %v2927_v22 = vsel %vm170_vm2, %v2924_v20, -inf }
 0x97a   :  { %2928 = vmax.xlane.f32.xlu1 %v2927_v22  ;;  %v3088_v23 = vpop.f32.mrb[30].mxu0 }
 0x97b   :  { %v3089_v24 = vadd.f32 %v3629_v6, %v3088_v23  ;;  %v3963_v25 = vpop.f32.mrb[31].mxu0 }
 0x97d   :  { %v3092_v26 = vsel %vm170_vm2, %v3089_v24, -inf }
 0x97e   :  { %3093 = vmax.xlane.f32.xlu0 %v3092_v26 }
 0x981   :  { %v1921_v27 = vpop.xlane.xlu0 %1920 }
 0x982   :  { %v1922_v28 = vsub.f32 %v1916_v57, %v1921_v27 }
 0x984   :  { %v1923_v29 = vmul.f32 1.442695, %v1922_v28 }
 0x986   :  { %4131 = vpow2.f32 %v1923_v29 }
 0x98b   :  { %2425 = vrot.lane.b32.xlu1 %v4581_v37, %s4280_s9 }
 0x990   :  { %v4132_v31 = vpop.eup %4131 }
 0x991   :  { %v1925_v33 = vsel %vm170_vm2, %v4132_v31, 0.0 }
 0x994   :  { %2260 = vrot.lane.b32.xlu0 %v4581_v37, %s4278_s7 }
 0x9af   :  { %1926 = vadd.xlane.f32.xlu1 %v1925_v33 }
 0x9f3   :  { %v2086_v36 = vpop.xlane.xlu1 %2085 }
 0x9f4   :  { %v2087_v38 = vsub.f32 %v2081_v61, %v2086_v36 }
 0x9f6   :  { %v2088_v39 = vmul.f32 1.442695, %v2087_v38 }
 0x9f7   :  { %v2251_v40 = vpop.xlane.xlu0 %2250 }
 0x9f8   :  { %4133 = vpow2.f32 %v2088_v39  ;;  %v2252_v41 = vsub.f32 %v2246_v5, %v2251_v40 }
 0x9fa   :  { %v2253_v42 = vmul.f32 1.442695, %v2252_v41 }
 0x9fb   :  { %v2416_v43 = vpop.xlane.xlu0 %2415 }
 0x9fc   :  { %4135 = vpow2.f32 %v2253_v42  ;;  %v2417_v44 = vsub.f32 %v2411_v3, %v2416_v43 }
 0x9fe   :  { %v2418_v37 = vmul.f32 1.442695, %v2417_v44 }
 0x9ff   :  { %v2599_v51 = vpop.xlane.xlu1 %2598 }
 0xa00   :  { %4137 = vpow2.f32 %v2418_v37  ;;  %v2600_v52 = vsub.f32 %v2594_v11, %v2599_v51  ;;  %v1834_v51 = vld [vmem:[#allocation7 + $0x98] sm:$0xff] }
 0xa02   :  { %v4134_v45 = vpop.eup %4133  ;;  %v2601_v55 = vmul.f32 1.442695, %v2600_v52 }
 0xa03   :  { %v2090_v46 = vsel %vm170_vm2, %v4134_v45, 0.0  ;;  %v2764_v13 = vpop.xlane.xlu0 %2763 }
 0xa04   :  { %2091 = vadd.xlane.f32.xlu0 %v2090_v46  ;;  %v2765_v54 = vsub.f32 %v2759_v17, %v2764_v13  ;;  %4139 = vpow2.f32 %v2601_v55 }
 0xa06   :  { %v4136_v47 = vpop.eup %4135  ;;  %v2766_v58 = vmul.f32 1.442695, %v2765_v54 }
 0xa07   :  { %v2255_v48 = vsel %vm170_vm2, %v4136_v47, 0.0  ;;  %v2929_v53 = vpop.xlane.xlu1 %2928 }
 0xa08   :  { %2256 = vadd.xlane.f32.xlu1 %v2255_v48  ;;  %v2930_v56 = vsub.f32 %v2924_v20, %v2929_v53  ;;  %4141 = vpow2.f32 %v2766_v58  ;;  %v1831_v48 = vld [vmem:[#allocation7 + $0x80] sm:$0xff] }
 0xa0a   :  { %v4666_v49 = vpop.eup %4137  ;;  %v2931_v59 = vmul.f32 1.442695, %v2930_v56 }
 0xa0b   :  { %v2420_v50 = vsel %vm170_vm2, %v4666_v49, 0.0  ;;  %v3094_v57 = vpop.xlane.xlu0 %3093  ;;  %v2426_v62 = vpop.permute.xlu1 %2425 }
 0xa0c   :  { %2421 = vadd.xlane.f32.xlu0 %v2420_v50  ;;  %v3095_v60 = vsub.f32 %v3089_v24, %v3094_v57  ;;  %4143 = vpow2.f32 %v2931_v59  ;;  %v1833_v50 = vld [vmem:[#allocation7 + $0x90] sm:$0xff] }
 0xa0d   :  { %v4046_v52 = vpack.c.bf16 %v1834_v51, %v1833_v50  ;;  %v3419_v50 = vld [vmem:[#allocation7 + $0xc0] sm:$0xff]  ;;  %v3420_v51 = vld [vmem:[#allocation7 + $0xc8] sm:$0xff] }
 0xa0e   :  { %v3096_v61 = vmul.f32 1.442695, %v3095_v60  ;;  %v4140_v63 = vpop.eup %4139 }
 0xa0f   :  { %v2603_v0 = vsel %vm170_vm2, %v4140_v63, 0.0  ;;  %v2261_v11 = vpop.permute.xlu0 %2260 }
 0xa10   :  { %4145 = vpow2.f32 %v3096_v61 }
 0xa12   :  { %v4674_v7 = vpop.eup %4141 }
 0xa13   :  { %v2768_v3 = vsel %vm170_vm2, %v4674_v7, 0.0 }
 0xa16   :  { %v4677_v1 = vpop.eup %4143 }
 0xa17   :  { %v2933_v2 = vsel %vm170_vm2, %v4677_v1, 0.0 }
 0xa19   :  { %2773 = vrot.lane.b32.xlu1 %v4579_v35, %s4279_s8 }
 0xa1a   :  { %v4683_v4 = vpop.eup %4145 }
 0xa1b   :  { %v3098_v6 = vsel %vm170_vm2, %v4683_v4, 0.0 }
 0xa22   :  { %2608 = vrot.lane.b32.xlu0 %v4579_v35, %s4277_s29 }
 0xa3c   :  { %v1927_v5 = vpop.xlane.xlu1 %1926 }
 0xa3d   :  { %4147 = vrcp.f32 %v1927_v5  ;;  %2604 = vadd.xlane.f32.xlu1 %v2603_v0 }
 0xa41   :  { %2934 = vadd.xlane.f32.xlu1 %v2933_v2  ;;  %2769 = vadd.xlane.f32.xlu0 %v2768_v3 }
 0xa45   :  { %3099 = vadd.xlane.f32.xlu1 %v3098_v6 }
 0xa47   :  { %v4148_v9 = vpop.eup %4147 }
 0xa48   :  { %v1929_v10 = vmul.f32 %v4148_v9, %v4132_v31  ;;  %v3642_v9 = vld [vmem:[#allocation7 + $0x106] ss:$0 sm:$0xff] }
 0xa4a   :  { %3897 = vmatmul.mubr.msk.f32.vlgmr.msra.gmra.mrb[24].mxu1 %vm170_vm2, %v1929_v10 }
 0xa4b   :  { %3905 = vmatpush3.msra.mxu1 %v2096_v34  ;;  %3906 = vmatprep.mubr.msk.f32.mxu1 %vm4275_vm1, %v4274_v8 }
 0xa4c   :  { %3914 = vmatprep.subr.mxu1 %v4274_v8 }
 0xa56   :  { %3103 = vrot.lane.b32.xlu1 %v4579_v35, %s4280_s9 }
 0xa57   :  { %2938 = vrot.lane.b32.xlu0 %v4579_v35, %s4278_s7 }
 0xa91   :  { %v2092_v14 = vpop.xlane.xlu0 %2091 }
 0xa92   :  { %4149 = vrcp.f32 %v2092_v14 }
 0xa95   :  { %v2257_v15 = vpop.xlane.xlu1 %2256 }
 0xa96   :  { %4151 = vrcp.f32 %v2257_v15 }
 0xa99   :  { %v2422_v16 = vpop.xlane.xlu0 %2421  ;;  %v2774_v22 = vpop.permute.xlu1 %2773 }
 0xa9a   :  { %4153 = vrcp.f32 %v2422_v16 }
 0xa9c   :  { %v4150_v17 = vpop.eup %4149 }
 0xa9d   :  { %v2094_v12 = vmul.f32 %v4150_v17, %v4134_v45  ;;  %v2609_v21 = vpop.permute.xlu0 %2608 }
 0xa9f   :  { %3907 = vmatmul.mubr.msk.f32.vlgmr.msra.gmra.mrb[26].mxu1 %vm170_vm2, %v2094_v12 }
 0xaa0   :  { %v4152_v18 = vpop.eup %4151  ;;  %3915 = vmatpush3.msra.mxu1 %v2261_v11  ;;  %3916 = vmatprep.mubr.msk.f32.mxu1 %vm4275_vm1, %v4274_v8 }
 0xaa1   :  { %v2259_v19 = vmul.f32 %v4152_v18, %v4136_v47  ;;  %3924 = vmatprep.subr.mxu1 %v4274_v8 }
 0xaa3   :  { %3917 = vmatmul.mubr.msk.f32.vlgmr.msra.gmra.mrb[28].mxu1 %vm170_vm2, %v2259_v19 }
 0xaa4   :  { %v4154_v35 = vpop.eup %4153  ;;  %3925 = vmatpush3.msra.mxu1 %v2426_v62  ;;  %3926 = vmatprep.mubr.msk.f32.mxu1 %vm4275_vm1, %v4274_v8 }
 0xaa5   :  { %v2424_v20 = vmul.f32 %v4154_v35, %v4666_v49  ;;  %3934 = vmatprep.subr.mxu1 %v4274_v8 }
 0xaa7   :  { %3927 = vmatmul.mubr.msk.f32.vlgmr.msra.gmra.mrb[30].mxu1 %vm170_vm2, %v2424_v20 }
 0xaa8   :  { %3935 = vmatpush3.msra.mxu1 %v2609_v21  ;;  %3936 = vmatprep.mubr.msk.f32.mxu1 %vm4275_vm1, %v4274_v8 }
 0xaa9   :  { %3944 = vmatprep.subr.mxu1 %v4274_v8 }
 0xaca   :  { %v2605_v23 = vpop.xlane.xlu1 %2604 }
 0xacb   :  { %4155 = vrcp.f32 %v2605_v23 }
 0xace   :  { %v2935_v24 = vpop.xlane.xlu1 %2934  ;;  %v2770_v25 = vpop.xlane.xlu0 %2769 }
 0xacf   :  { %4157 = vrcp.f32 %v2770_v25 }
 0xad0   :  { %4159 = vrcp.f32 %v2935_v24 }
 0xad2   :  { %v3100_v26 = vpop.xlane.xlu1 %3099  ;;  %v2939_v34 = vpop.permute.xlu0 %2938 }
 0xad3   :  { %4161 = vrcp.f32 %v3100_v26 }
 0xad5   :  { %v4156_v27 = vpop.eup %4155 }
 0xad6   :  { %v2607_v28 = vmul.f32 %v4156_v27, %v4140_v63  ;;  %v3104_v39 = vpop.permute.xlu1 %3103  ;;  %v3320_v27 = vld [vmem:[#allocation7 + $0xa8] sm:$0xff] }
 0xad8   :  { %3937 = vmatmul.mubr.msk.f32.vlgmr.msra.gmra.mrb[32].mxu1 %vm170_vm2, %v2607_v28 }
 0xad9   :  { %3945 = vmatpush3.msra.mxu1 %v2774_v22  ;;  %3946 = vmatprep.mubr.msk.f32.mxu1 %vm4275_vm1, %v4274_v8  ;;  %v4158_v29 = vpop.eup %4157 }
 0xada   :  { %3954 = vmatprep.subr.mxu1 %v4274_v8  ;;  %v2772_v31 = vmul.f32 %v4158_v29, %v4674_v7  ;;  %v4160_v33 = vpop.eup %4159  ;;  %v3321_v29 = vld [vmem:[#allocation7 + $0xb0] sm:$0xff] }
 0xadb   :  { %v2937_v36 = vmul.f32 %v4160_v33, %v4677_v1 }
 0xadc   :  { %3947 = vmatmul.mubr.msk.f32.vlgmr.msra.gmra.mrb[34].mxu1 %vm170_vm2, %v2772_v31  ;;  %v3322_v31 = vld [vmem:[#allocation7 + $0xb8] sm:$0xff] }
 0xadd   :  { %3955 = vmatpush3.msra.mxu1 %v2939_v34  ;;  %3956 = vmatprep.mubr.msk.f32.mxu1 %vm4275_vm1, %v4274_v8  ;;  %v4162_v38 = vpop.eup %4161  ;;  %v4054_v33 = vpack.c.bf16 %v3322_v31, %v3321_v29 }
 0xade   :  { %3964 = vmatprep.subr.mxu1 %v4274_v8  ;;  %v3102_v40 = vmul.f32 %v4162_v38, %v4683_v4 }
 0xae0   :  { %3957 = vmatmul.mubr.msk.f32.vlgmr.msra.gmra.mrb[36].mxu1 %vm170_vm2, %v2937_v36 }
 0xae1   :  { %3965 = vmatpush3.msra.mxu1 %v3104_v39  ;;  %3966 = vmatprep.mubr.msk.f32.mxu1 %vm4275_vm1, %v4274_v8  ;;  %v1832_v8 = vld [vmem:[#allocation7 + $0x88] sm:$0xff] }
 0xae2   :  { %v4042_v49 = vpack.c.bf16 %v1832_v8, %v1831_v48 }
 0xae4   :  { %3967 = vmatmul.mubr.msk.f32.vlgmr.msra.gmra.mrb[38].mxu1 %vm170_vm2, %v3102_v40  ;;  %4043 = vmatprep.subr.bf16.mxu0 %v4042_v49 }
 0xae5   :  { %4045 = vmatpush3.bf16.msra.mxu0 %v4042_v49 }
 0xae6   :  { %4047 = vmatprep.subr.bf16.mxu0 %v4046_v52 }
 0xae9   :  { %4049 = vmatpush3.bf16.msra.mxu0 %v4046_v52  ;;  %v4058_v52 = vpack.c.bf16 %v3420_v51, %v3419_v50 }
 0xaeb   :  { %4059 = vmatprep.subr.bf16.mxu0 %v4058_v52 }
 0xb1d   :  { %v2002_v41 = vpop.f32.mrb[24].mxu1 }
 0xb1e   :  { %v3898_v42 = vpop.f32.mrb[25].mxu1 }
 0xb72   :  { %v2167_v43 = vpop.f32.mrb[26].mxu1 }
 0xb73   :  { %2502 = vrot.lane.b32.xlu0 %v2167_v43, %s4272_s6  ;;  %v3908_v44 = vpop.f32.mrb[27].mxu1  ;;  %v3645_v43 = vld [vmem:[#allocation7 + $0x107] ss:$0 sm:$0xff] }
 0xb76   :  { %v2332_v37 = vpop.f32.mrb[28].mxu1 }
 0xb77   :  { %2506 = vrot.lane.b32.xlu1 %v2332_v37, %s4287_s18  ;;  %v3918_v45 = vpop.f32.mrb[29].mxu1  ;;  %v3646_v37 = vld [vmem:[#allocation7 + $0x108] ss:$0 sm:$0xff] }
 0xb7a   :  { %v2497_v46 = vpop.f32.mrb[30].mxu1 }
 0xb7b   :  { %2510 = vrot.lane.b32.xlu1 %v2497_v46, %s4288_s19  ;;  %v3928_v47 = vpop.f32.mrb[31].mxu1 }
 0xbab   :  { %v2680_v13 = vpop.f32.mrb[32].mxu1 }
 0xbac   :  { %v3938_v53 = vpop.f32.mrb[33].mxu1 }
 0xbad   :  { %v3422_v53 = vld [vmem:[#allocation7 + $0xd8] sm:$0xff] }
 0xbaf   :  { %v2845_v54 = vpop.f32.mrb[34].mxu1 }
 0xbb0   :  { %3180 = vrot.lane.b32.xlu0 %v2845_v54, %s4272_s6  ;;  %v3948_v55 = vpop.f32.mrb[35].mxu1 }
 0xbb1   :  { %v3423_v55 = vld [vmem:[#allocation7 + $0xe0] sm:$0xff] }
 0xbb3   :  { %v3010_v56 = vpop.f32.mrb[36].mxu1 }
 0xbb4   :  { %3184 = vrot.lane.b32.xlu0 %v3010_v56, %s4287_s18  ;;  %v3958_v57 = vpop.f32.mrb[37].mxu1  ;;  %v3424_v56 = vld [vmem:[#allocation7 + $0xe8] sm:$0xff] }
 0xbb5   :  { %v4066_v57 = vpack.c.bf16 %v3424_v56, %v3423_v55 }
 0xbb7   :  { %v3175_v58 = vpop.f32.mrb[38].mxu1 }
 0xbb8   :  { %3188 = vrot.lane.b32.xlu1 %v3175_v58, %s4288_s19  ;;  %v3968_v59 = vpop.f32.mrb[39].mxu1  ;;  %v3425_v58 = vld [vmem:[#allocation7 + $0xf0] sm:$0xff] }
 0xbb9   :  { %v3426_v59 = vld [vmem:[#allocation7 + $0xf8] sm:$0xff] }
 0xbe5   :  { %v2503_v60 = vpop.permute.xlu0 %2502 }
 0xbe6   :  { %v2513_v62 = vsel %vm170_vm2, %v2002_v41, %v2503_v60  ;;  %v4070_v60 = vpack.c.bf16 %v3426_v59, %v3425_v58 }
 0xbe9   :  { %v2507_v61 = vpop.permute.xlu1 %2506 }
 0xbea   :  { %v2514_v63 = vsel %vm840_vm3, %v2513_v62, %v2507_v61  ;;  %v3647_v61 = vld [vmem:[#allocation7 + $0x109] ss:$0 sm:$0xff] }
 0xbed   :  { %v2511_v7 = vpop.permute.xlu1 %2510 }
 0xbee   :  { %v2515_v5 = vsel %vm842_vm4, %v2514_v63, %v2511_v7 }
 0xbef   :  { %3977 = vmatprep.mubr.msk.f32.mxu0 %vm73_vm0, %v2515_v5 }
 0xc22   :  { %v3181_v0 = vpop.permute.xlu0 %3180 }
 0xc23   :  { %v3191_v2 = vsel %vm170_vm2, %v2680_v13, %v3181_v0  ;;  %v3421_v13 = vld [vmem:[#allocation7 + $0xd0] sm:$0xff] }
 0xc24   :  { %v4062_v54 = vpack.c.bf16 %v3422_v53, %v3421_v13 }
 0xc26   :  { %v3185_v1 = vpop.permute.xlu0 %3184 }
 0xc27   :  { %v3192_v3 = vsel %vm840_vm3, %v3191_v2, %v3185_v1 }
 0xc2a   :  { %v3189_v4 = vpop.permute.xlu1 %3188 }
 0xc2b   :  { %v3193_v6 = vsel %vm842_vm4, %v3192_v3, %v3189_v4 }
 0xc2c   :  { %3978 = vmatmul.mubr.msk.f32.vlgmr.msra.gmra.mrb[32].mxu0 %vm73_vm0, %v3193_v6 }
 0xc2d   :  { %4061 = vmatpush3.bf16.msra.mxu0 %v4058_v52 }
 0xc2e   :  { %4063 = vmatprep.subr.bf16.mxu0 %v4062_v54 }
 0xc31   :  { %4065 = vmatpush3.bf16.msra.mxu0 %v4062_v54 }
 0xc32   :  { %4067 = vmatprep.subr.bf16.mxu0 %v4066_v57 }
 0xc35   :  { %4069 = vmatpush3.bf16.msra.mxu0 %v4066_v57 }
 0xc36   :  { %4071 = vmatprep.subr.bf16.mxu0 %v4070_v60 }
 0xc39   :  { %4073 = vmatpush3.bf16.msra.mxu0 %v4070_v60 }
 0xcff   :  { %v3979_v10 = vpop.f32.mrb[32].mxu0 }
 0xd00   :  { %v3276_v11 = vadd.f32 %v3979_v10, %v3642_v9  ;;  %v3270_v14 = vpop.f32.mrb[33].mxu0 }
 0xd01   :  { %v3271_v15 = vadd.f32 %v3642_v9, %v3270_v14 }
 0xd02   :  { %v3280_v16 = vadd.f32 %v3276_v11, %v4573_v32 }
 0xd03   :  { %v3279_v17 = vadd.f32 %v3271_v15, %v4569_v30  ;;  %v3319_v30 = vld [vmem:[#allocation7 + $0xa0] sm:$0xff]  ;;  %v3650_v15 = vld [vmem:[#allocation7 + $0x10a] ss:$0 sm:$0xff] }
 0xd04   :  { %v3284_v12 = vsel %vm73_vm0, %v3280_v16, 0.0  ;;  %v4050_v28 = vpack.c.bf16 %v3320_v27, %v3319_v30 }
 0xd05   :  { %3285 = vadd.xlane.f32.xlu1 %v3284_v12  ;;  %v3281_v18 = vsel %vm73_vm0, %v3279_v17, 0.0 }
 0xd06   :  { %3282 = vadd.xlane.f32.xlu0 %v3281_v18  ;;  %4051 = vmatprep.subr.bf16.mxu1 %v4050_v28 }
 0xd07   :  { %4053 = vmatpush3.bf16.msra.mxu1 %v4050_v28 }
 0xd08   :  { %4055 = vmatprep.subr.bf16.mxu1 %v4054_v33 }
 0xd0b   :  { %4057 = vmatpush3.bf16.msra.mxu1 %v4054_v33 }
 0xd92   :  { %v3286_v19 = vpop.xlane.xlu1 %3285 }
 0xd93   :  { %v3288_v35 = vmul.f32 0.03125, %v3286_v19  ;;  %v3283_v20 = vpop.xlane.xlu0 %3282 }
 0xd94   :  { %v3287_v21 = vmul.f32 0.03125, %v3283_v20 }
 0xd95   :  { %v3290_v22 = vsub.f32 %v3280_v16, %v3288_v35 }
 0xd96   :  { %v3289_v23 = vsub.f32 %v3279_v17, %v3287_v21 }
 0xd97   :  { %v3292_v26 = vmul.f32 %v3290_v22, %v3290_v22 }
 0xd98   :  { %v3291_v24 = vmul.f32 %v3289_v23, %v3289_v23 }
 0xd99   :  { %v3296_v32 = vsel %vm73_vm0, %v3292_v26, 0.0 }
 0xd9a   :  { %v3293_v25 = vsel %vm73_vm0, %v3291_v24, 0.0 }
 0xd9b   :  { %3294 = vadd.xlane.f32.xlu0 %v3293_v25 }
 0xd9f   :  { %3297 = vadd.xlane.f32.xlu0 %v3296_v32 }
 0xe28   :  { %v3295_v34 = vpop.xlane.xlu0 %3294 }
 0xe29   :  { %v3299_v36 = vmul.f32 0.03125, %v3295_v34 }
 0xe2b   :  { %v3301_v38 = vadd.f32 1e-12, %v3299_v36 }
 0xe2c   :  { %v3298_v39 = vpop.xlane.xlu0 %3297 }
 0xe2d   :  { %4163 = vrsqrt.f32 %v3301_v38  ;;  %v3300_v40 = vmul.f32 0.03125, %v3298_v39 }
 0xe2f   :  { %v3302_v41 = vadd.f32 1e-12, %v3300_v40 }
 0xe31   :  { %4165 = vrsqrt.f32 %v3302_v41  ;;  %v3653_v41 = vld [vmem:[#allocation7 + $0x10b] ss:$0 sm:$0xff] }
 0xe37   :  { %v4164_v42 = vpop.eup %4163 }
 0xe38   :  { %v3305_v44 = vmul.f32 %v4164_v42, %v3289_v23 }
 0xe3a   :  { %v3311_v45 = vmul.f32 %v3645_v43, %v3305_v44 }
 0xe3b   :  { %v4166_v46 = vpop.eup %4165 }
 0xe3c   :  { %v3306_v47 = vmul.f32 %v4166_v46, %v3290_v22  ;;  %v3317_v48 = vadd.f32 %v3646_v37, %v3311_v45 }
 0xe3e   :  { %v3312_v8 = vmul.f32 %v3645_v43, %v3306_v47  ;;  %3988 = vmatprep.mubr.msk.f32.mxu1 %vm73_vm0, %v3317_v48 }
 0xe40   :  { %v3318_v49 = vadd.f32 %v3646_v37, %v3312_v8  ;;  %v3654_v37 = vld [vmem:[#allocation7 + $0x10c] ss:$0 sm:$0xff] }
 0xe42   :  { %3989 = vmatmul.mubr.msk.f32.vlgmr.msra.gmra.mrb[40].mxu1 %vm73_vm0, %v3318_v49 }
 0xf15   :  { %v3990_v62 = vpop.f32.mrb[40].mxu1 }
 0xf16   :  { %v3406_v63 = vadd.f32 %v3990_v62, %v3647_v61  ;;  %v3400_v7 = vpop.f32.mrb[41].mxu1 }
 0xf17   :  { %v3401_v5 = vadd.f32 %v3647_v61, %v3400_v7 }
 0xf18   :  { %v3412_v0 = vmul.f32 0.70710677, %v3406_v63  ;;  %v3410_v10 = vmul.f32 0.5, %v3406_v63 }
 0xf19   :  { %v3411_v1 = vmul.f32 0.70710677, %v3401_v5  ;;  %v3409_v6 = vmul.f32 0.5, %v3401_v5 }
 0xf1a   :  { %4167 = verf.f32 %v3412_v0 }
 0xf1b   :  { %4169 = verf.f32 %v3411_v1 }
 0xf24   :  { %v4168_v2 = vpop.eup %4167 }
 0xf25   :  { %v4170_v3 = vpop.eup %4169  ;;  %v3416_v4 = vadd.f32 1.0, %v4168_v2 }
 0xf26   :  { %v3415_v9 = vadd.f32 1.0, %v4170_v3 }
 0xf27   :  { %v3418_v14 = vmul.f32 %v3416_v4, %v3410_v10 }
 0xf28   :  { %v3417_v11 = vmul.f32 %v3415_v9, %v3409_v6 }
 0xf2a   :  { %4007 = vmatprep.mubr.msk.f32.mxu0 %vm3432_vm5, %v3417_v11 }
 0xf2b   :  { %4008 = vmatmul.mubr.msk.f32.vlgmr.msra.gmra.mrb[34].mxu0 %vm3432_vm5, %v3418_v14 }
 0xffe   :  { %v4009_v16 = vpop.f32.mrb[34].mxu0 }
 0xfff   :  { %v3511_v17 = vadd.f32 %v4009_v16, %v3650_v15  ;;  %v3505_v12 = vpop.f32.mrb[35].mxu0 }
0x1000   :  { %v3506_v18 = vadd.f32 %v3650_v15, %v3505_v12 }
0x1001   :  { %v3515_v19 = vadd.f32 %v3511_v17, %v3318_v49 }
0x1002   :  { %v3514_v35 = vadd.f32 %v3506_v18, %v3317_v48 }
0x1003   :  { %v3521_v20 = vsel %vm73_vm0, %v3515_v19, 0.0 }
0x1004   :  { %3522 = vadd.xlane.f32.xlu0 %v3521_v20  ;;  %v3518_v21 = vsel %vm73_vm0, %v3514_v35, 0.0 }
0x1005   :  { %3519 = vadd.xlane.f32.xlu1 %v3518_v21 }
0x1091   :  { %v3523_v22 = vpop.xlane.xlu0 %3522 }
0x1092   :  { %v3525_v23 = vmul.f32 0.03125, %v3523_v22  ;;  %v3520_v24 = vpop.xlane.xlu1 %3519 }
0x1093   :  { %v3524_v25 = vmul.f32 0.03125, %v3520_v24 }
0x1094   :  { %v3527_v26 = vsub.f32 %v3515_v19, %v3525_v23 }
0x1095   :  { %v3526_v32 = vsub.f32 %v3514_v35, %v3524_v25 }
0x1096   :  { %v3529_v30 = vmul.f32 %v3527_v26, %v3527_v26 }
0x1097   :  { %v3528_v27 = vmul.f32 %v3526_v32, %v3526_v32 }
0x1098   :  { %v3533_v28 = vsel %vm73_vm0, %v3529_v30, 0.0 }
0x1099   :  { %3534 = vadd.xlane.f32.xlu0 %v3533_v28  ;;  %v3530_v29 = vsel %vm73_vm0, %v3528_v27, 0.0 }
0x109a   :  { %3531 = vadd.xlane.f32.xlu1 %v3530_v29 }
0x1126   :  { %v3535_v31 = vpop.xlane.xlu0 %3534 }
0x1127   :  { %v3537_v33 = vmul.f32 0.03125, %v3535_v31  ;;  %v3532_v34 = vpop.xlane.xlu1 %3531 }
0x1128   :  { %v3536_v36 = vmul.f32 0.03125, %v3532_v34 }
0x1129   :  { %v3539_v38 = vadd.f32 1e-12, %v3537_v33 }
0x112a   :  { %v3538_v39 = vadd.f32 1e-12, %v3536_v36 }
0x112b   :  { %4171 = vrsqrt.f32 %v3539_v38 }
0x112c   :  { %4173 = vrsqrt.f32 %v3538_v39 }
0x1135   :  { %v4172_v40 = vpop.eup %4171 }
0x1136   :  { %v4174_v42 = vpop.eup %4173  ;;  %v3543_v43 = vmul.f32 %v4172_v40, %v3527_v26 }
0x1137   :  { %v3542_v44 = vmul.f32 %v4174_v42, %v3526_v32 }
0x1138   :  { %v3549_v45 = vmul.f32 %v3653_v41, %v3543_v43 }
0x1139   :  { %v3548_v46 = vmul.f32 %v3653_v41, %v3542_v44 }
0x113a   :  { %v3555_v47 = vadd.f32 %v3654_v37, %v3549_v45 }
0x113b   :  { %v3554_v48 = vadd.f32 %v3654_v37, %v3548_v46 }
0x113c   :  { %3557 = vst.msk [vmem:[#allocation8 + $0x8] sm:$0xff] %vm73_vm0, %v3555_v47 }
0x113d   :  { %3556 = vst.msk [vmem:[#allocation8] sm:$0xff] %vm73_vm0, %v3554_v48 }
0x113e   :  { %4252 = shalt.err (!%p4249_p0)
}
0x113f   :  { %s4253_s0 = scalar_lea.hbm %s4771_s5, 256 }
0x1140   :  { %p4254_p1 = scmp.ne.s32.totalorder %s4771_s5, %s4253_s0  ;;  %p4257_p2 = scmp.lt.u32.totalorder %s4253_s0, %s4771_s5 }
0x1142   :  { %p4259_p3 = pnand %p4257_p2, %p4254_p1 }
0x1144   :  { %4262 = shalt.err (!%p4259_p3)
}
0x1145   :  { %3569 = dma.vmem_to_hbm [thread:$0]  %s3564_s25, 256, %s4771_s5, [#allocation4], %s4271_s30, %s4271_s30, %s4272_s6  }
0x1146   :  { %4267 = dma.done.wait [#allocation4], 256  }
0x1147   :  { %4268 = vsyncadd [#allocation4], 4294967040 }
0x1148   :  { %3573 = vsyncpa [#allocation3], 1 }
0x1149   :  { %3574 = vsyncpa [#allocation6], 1 }
0x114a   :  { %3575 = vsyncpa [#allocation4], 1 }

</bundles_post_ra>
